<compile_context>
chip_gen: v6e
topology: v6e:2x2x1
jax: 0.10.0
libtpu: 0.0.40
codegen_flags: <defaults>
</compile_context>

<pallas_src>
import math

import jax
import jax.numpy as jnp
from jax.experimental import pallas as pl
from jax.experimental.pallas import tpu as pltpu

BN_EPS = 1e-5
MATMUL_DTYPE = jnp.bfloat16   # set to jnp.float32 for bit-tighter numerics


# --------------------------------------------------------------------------
# Tile selection
# --------------------------------------------------------------------------
def _pick_tile(m, cap=4096):
    """Largest multiple-of-8 divisor of m (<= cap), preferring >= 2 grid steps
    so both v7x TensorCores get work."""
    divs = [t for t in range(8, min(m, cap) + 1, 8) if m % t == 0]
    if not divs:
        return m                       # m < 8: single full block
    best = divs[-1]
    if best == m:                      # keep >= 2 parallel steps when possible
        small = [t for t in divs if t <= m // 2]
        if small:
            return small[-1]
    return best


# --------------------------------------------------------------------------
# Fused AttentionGate kernel
# --------------------------------------------------------------------------
def _gate_kernel(gt_ref, x_ref, wg_ref, wx_ref, bgx_ref, wpsi_ref, bpsi_ref,
                 o_ref):
    """One pixel-tile of: x * sigmoid(psi(relu(maxpool(BN(Wg g)) + BN(Wx x))))."""
    x_f32 = x_ref[...]                                     # (tm, F_l) f32, reused for x*psi
    x_mm = x_f32.astype(wx_ref.dtype)

    # W_g conv (BN scale pre-folded into wg) on the four 2x2-pool taps, then
    # elementwise max == maxpool(BN(conv1x1(g))) up to the tap-independent
    # bias, which is added below. Static unroll: no grid axis, no scratch.
    g1 = jnp.dot(gt_ref[0], wg_ref[...], preferred_element_type=jnp.float32)
    for t in range(1, 4):
        g1 = jnp.maximum(
            g1, jnp.dot(gt_ref[t], wg_ref[...],
                        preferred_element_type=jnp.float32))

    x1 = jnp.dot(x_mm, wx_ref[...], preferred_element_type=jnp.float32)

    # relu(g1 + x1 + (bias_g + bias_x))
    psi = jnp.maximum(g1 + x1 + bgx_ref[...], 0.0)
    # psi 1x1 conv (F_int -> 1) with its BN scale folded into the weight
    # vector: a VPU multiply + cross-lane reduce instead of a 1-column MXU op.
    psi = jnp.sum(psi * wpsi_ref[...], axis=-1, keepdims=True) + bpsi_ref[...]
    psi = jax.nn.sigmoid(psi)                              # (tm, 1)

    o_ref[...] = (x_f32 * psi).astype(o_ref.dtype)         # fused gating epilogue


def attention_gate(params, g, x):
    """g: (B, 2H, 2W, F_g), x: (B, H, W, F_l), NHWC -> (B, H, W, F_l)."""
    B, Hg, Wg, Fg = g.shape
    Bx, Hx, Wx, Fl = x.shape
    assert (Bx, Hg, Wg) == (B, 2 * Hx, 2 * Wx), (g.shape, x.shape)
    Fint = params["wg"]["w"].shape[-1]
    M = B * Hx * Wx
    tm = _pick_tile(M)

    # Four 2x2-pool taps of g laid out as (4, M, F_g): a pure layout permute
    # (same total size as g, no im2col blow-up). Cast to the matmul dtype to
    # halve the kernel's HBM read of g.
    gt = (g.reshape(B, Hx, 2, Wx, 2, Fg)
           .transpose(2, 4, 0, 1, 3, 5)
           .reshape(4, M, Fg)
           .astype(MATMUL_DTYPE))
    xf = x.reshape(M, Fl)                                  # f32: also needed for x*psi

    # Fold BN scales into the conv weights; merge the two tap-independent
    # conv biases into one vector; fold the psi BN scale into the psi weights.
    wg = (params["wg"]["w"] * params["wg"]["scale"]).astype(MATMUL_DTYPE)   # (F_g, F_int)
    wx = (params["wx"]["w"] * params["wx"]["scale"]).astype(MATMUL_DTYPE)   # (F_l, F_int)
    bgx = (params["wg"]["bias"] + params["wx"]["bias"]).reshape(1, Fint)
    wpsi = (params["psi"]["w"][:, 0] * params["psi"]["scale"]).reshape(1, Fint)
    bpsi = params["psi"]["bias"].reshape(1, 1)

    bcast2 = lambda i: (0, 0)
    out = pl.pallas_call(
        _gate_kernel,
        out_shape=jax.ShapeDtypeStruct((M, Fl), jnp.float32),
        grid_spec=pltpu.PrefetchScalarGridSpec(
            num_scalar_prefetch=0,
            grid=(M // tm,),
            in_specs=[
                pl.BlockSpec((4, tm, Fg), lambda i: (0, i, 0)),   # g pool taps
                pl.BlockSpec((tm, Fl), lambda i: (i, 0)),         # x
                pl.BlockSpec((Fg, Fint), bcast2),                 # W_g (BN-folded)
                pl.BlockSpec((Fl, Fint), bcast2),                 # W_x (BN-folded)
                pl.BlockSpec((1, Fint), bcast2),                  # bias_g + bias_x
                pl.BlockSpec((1, Fint), bcast2),                  # w_psi (BN-folded)
                pl.BlockSpec((1, 1), bcast2),                     # b_psi
            ],
            out_specs=pl.BlockSpec((tm, Fl), lambda i: (i, 0)),
        ),
        compiler_params=pltpu.CompilerParams(
            dimension_semantics=("parallel",)),
    )(gt, xf, wg, wx, bgx, wpsi, bpsi)
    return out.reshape(B, Hx, Wx, Fl)


# --------------------------------------------------------------------------
# Deterministic parameters (Conv2d bias=True + fresh eval-mode BatchNorm folded)
# --------------------------------------------------------------------------
class KeyGen:
    def __init__(self, key):
        self.key = key

    def __call__(self):
        self.key, k = jax.random.split(self.key)
        return k


def make_conv1x1_bn(kg, cin, cout):
    """Conv2d(cin, cout, 1, bias=True) + BatchNorm2d(cout) folded in eval mode.
    Fresh BN (gamma=1, beta=0, mean=0, var=1): scale = 1/sqrt(1+eps),
    bias = conv_bias * scale."""
    w = jax.random.normal(kg(), (cin, cout), jnp.float32) / math.sqrt(cin)
    b = jax.random.normal(kg(), (cout,), jnp.float32) * 0.01
    scale = jnp.full((cout,), 1.0 / math.sqrt(1.0 + BN_EPS), jnp.float32)
    return dict(w=w, scale=scale, bias=b * scale)


def make_attention_gate(kg, f_g, f_l, f_int):
    return dict(wg=make_conv1x1_bn(kg, f_g, f_int),
                wx=make_conv1x1_bn(kg, f_l, f_int),
                psi=make_conv1x1_bn(kg, f_int, 1))


# --------------------------------------------------------------------------
# Pure-JAX reference (for correctness check)
# --------------------------------------------------------------------------
def attention_gate_ref(params, g, x):
    def conv_bn(z, cp):
        y = jnp.einsum("bhwc,cd->bhwd", z, cp["w"])
        return y * cp["scale"] + cp["bias"]

    g1 = conv_bn(g, params["wg"])
    B, Hg, Wg, C = g1.shape
    g1 = jnp.max(g1.reshape(B, Hg // 2, 2, Wg // 2, 2, C), axis=(2, 4))  # 2x2 maxpool
    x1 = conv_bn(x, params["wx"])
    psi = jax.nn.sigmoid(conv_bn(jnp.maximum(g1 + x1, 0.0), params["psi"]))
    return x * psi


# --------------------------------------------------------------------------
if __name__ == "__main__":
    kg = KeyGen(jax.random.PRNGKey(0))

    # Small shapes implied by the forward: F_int = F_l // 2, g spatial = 2x x.
    B, F_g, F_l, F_int = 2, 64, 128, 64
    Hx = Wx = 16
    params = make_attention_gate(kg, F_g, F_l, F_int)

    g = jax.random.normal(kg(), (B, 2 * Hx, 2 * Wx, F_g), jnp.float32)
    x = jax.random.normal(kg(), (B, Hx, Wx, F_l), jnp.float32)

    fwd = jax.jit(lambda g, x: attention_gate(params, g, x))
    out = fwd(g, x)
    jax.block_until_ready(out)

    ref = attention_gate_ref(params, g, x)
    assert out.shape == (B, Hx, Wx, F_l), out.shape
    assert bool(jnp.all(jnp.isfinite(out)))
    # bf16 matmul operands (f32 accumulation / f32 epilogue) -> loose tolerance.
    assert bool(jnp.allclose(out, ref, rtol=5e-2, atol=5e-2)), float(
        jnp.max(jnp.abs(out - ref)))
    print("KERNEL_OK")
</pallas_src>

<mosaic_0001>
module attributes {stable_mosaic.version = 11 : i64} {
  func.func @_gate_kernel(%arg0: i32, %arg1: memref<4x256x64xbf16, #tpu.memory_space<vmem>>, %arg2: memref<256x128xf32, #tpu.memory_space<vmem>>, %arg3: memref<64x64xbf16, #tpu.memory_space<vmem>>, %arg4: memref<128x64xbf16, #tpu.memory_space<vmem>>, %arg5: memref<1x64xf32, #tpu.memory_space<vmem>>, %arg6: memref<1x64xf32, #tpu.memory_space<vmem>>, %arg7: memref<1x1xf32, #tpu.memory_space<vmem>>, %arg8: memref<256x128xf32, #tpu.memory_space<vmem>>) attributes {dimension_semantics = [#tpu.dimension_semantics<parallel>], iteration_bounds = array<i64: 2>, scalar_prefetch = 0 : i64, scratch_operands = 0 : i64, tpu.core_type = #tpu.core_type<tc>, window_params = [{transform_indices = @transform_0, window_bounds = array<i64: 4, 256, 64>}, {transform_indices = @transform_1, window_bounds = array<i64: 256, 128>}, {pipeline_mode = #tpu.pipeline_mode<synchronous>, transform_indices = @transform_2, window_bounds = array<i64: 64, 64>}, {pipeline_mode = #tpu.pipeline_mode<synchronous>, transform_indices = @transform_3, window_bounds = array<i64: 128, 64>}, {pipeline_mode = #tpu.pipeline_mode<synchronous>, transform_indices = @transform_4, window_bounds = array<i64: 1, 64>}, {pipeline_mode = #tpu.pipeline_mode<synchronous>, transform_indices = @transform_5, window_bounds = array<i64: 1, 64>}, {pipeline_mode = #tpu.pipeline_mode<synchronous>, transform_indices = @transform_6, window_bounds = array<i64: 1, 1>}, {transform_indices = @transform_7, window_bounds = array<i64: 256, 128>}]} {
    %c0 = arith.constant 0 : index
    %c0_0 = arith.constant 0 : index
    %0 = vector.load %arg2[%c0, %c0_0] : memref<256x128xf32, #tpu.memory_space<vmem>>, vector<256x128xf32>
    %1 = arith.truncf %0 : vector<256x128xf32> to vector<256x128xbf16>
    %c0_1 = arith.constant 0 : index
    %c0_2 = arith.constant 0 : index
    %c0_3 = arith.constant 0 : index
    %2 = vector.load %arg1[%c0_1, %c0_2, %c0_3] : memref<4x256x64xbf16, #tpu.memory_space<vmem>>, vector<1x256x64xbf16>
    %3 = vector.shape_cast %2 : vector<1x256x64xbf16> to vector<256x64xbf16>
    %c0_4 = arith.constant 0 : index
    %c0_5 = arith.constant 0 : index
    %4 = vector.load %arg3[%c0_4, %c0_5] : memref<64x64xbf16, #tpu.memory_space<vmem>>, vector<64x64xbf16>
    %cst = arith.constant dense<0.000000e+00> : vector<256x64xf32>
    %5 = tpu.matmul %3, %4, %cst {dimension_numbers = #tpu.dot_dimension_numbers<[1], [0], [0], [1], [0, 0, 1, 1], [], []>} : vector<256x64xbf16>, vector<64x64xbf16>, vector<256x64xf32> -> vector<256x64xf32>
    %c1 = arith.constant 1 : index
    %c0_6 = arith.constant 0 : index
    %c0_7 = arith.constant 0 : index
    %6 = vector.load %arg1[%c1, %c0_6, %c0_7] : memref<4x256x64xbf16, #tpu.memory_space<vmem>>, vector<1x256x64xbf16>
    %7 = vector.shape_cast %6 : vector<1x256x64xbf16> to vector<256x64xbf16>
    %c0_8 = arith.constant 0 : index
    %c0_9 = arith.constant 0 : index
    %8 = vector.load %arg3[%c0_8, %c0_9] : memref<64x64xbf16, #tpu.memory_space<vmem>>, vector<64x64xbf16>
    %cst_10 = arith.constant dense<0.000000e+00> : vector<256x64xf32>
    %9 = tpu.matmul %7, %8, %cst_10 {dimension_numbers = #tpu.dot_dimension_numbers<[1], [0], [0], [1], [0, 0, 1, 1], [], []>} : vector<256x64xbf16>, vector<64x64xbf16>, vector<256x64xf32> -> vector<256x64xf32>
    %10 = arith.maximumf %5, %9 : vector<256x64xf32>
    %c2 = arith.constant 2 : index
    %c0_11 = arith.constant 0 : index
    %c0_12 = arith.constant 0 : index
    %11 = vector.load %arg1[%c2, %c0_11, %c0_12] : memref<4x256x64xbf16, #tpu.memory_space<vmem>>, vector<1x256x64xbf16>
    %12 = vector.shape_cast %11 : vector<1x256x64xbf16> to vector<256x64xbf16>
    %c0_13 = arith.constant 0 : index
    %c0_14 = arith.constant 0 : index
    %13 = vector.load %arg3[%c0_13, %c0_14] : memref<64x64xbf16, #tpu.memory_space<vmem>>, vector<64x64xbf16>
    %cst_15 = arith.constant dense<0.000000e+00> : vector<256x64xf32>
    %14 = tpu.matmul %12, %13, %cst_15 {dimension_numbers = #tpu.dot_dimension_numbers<[1], [0], [0], [1], [0, 0, 1, 1], [], []>} : vector<256x64xbf16>, vector<64x64xbf16>, vector<256x64xf32> -> vector<256x64xf32>
    %15 = arith.maximumf %10, %14 : vector<256x64xf32>
    %c3 = arith.constant 3 : index
    %c0_16 = arith.constant 0 : index
    %c0_17 = arith.constant 0 : index
    %16 = vector.load %arg1[%c3, %c0_16, %c0_17] : memref<4x256x64xbf16, #tpu.memory_space<vmem>>, vector<1x256x64xbf16>
    %17 = vector.shape_cast %16 : vector<1x256x64xbf16> to vector<256x64xbf16>
    %c0_18 = arith.constant 0 : index
    %c0_19 = arith.constant 0 : index
    %18 = vector.load %arg3[%c0_18, %c0_19] : memref<64x64xbf16, #tpu.memory_space<vmem>>, vector<64x64xbf16>
    %cst_20 = arith.constant dense<0.000000e+00> : vector<256x64xf32>
    %19 = tpu.matmul %17, %18, %cst_20 {dimension_numbers = #tpu.dot_dimension_numbers<[1], [0], [0], [1], [0, 0, 1, 1], [], []>} : vector<256x64xbf16>, vector<64x64xbf16>, vector<256x64xf32> -> vector<256x64xf32>
    %20 = arith.maximumf %15, %19 : vector<256x64xf32>
    %c0_21 = arith.constant 0 : index
    %c0_22 = arith.constant 0 : index
    %21 = vector.load %arg4[%c0_21, %c0_22] : memref<128x64xbf16, #tpu.memory_space<vmem>>, vector<128x64xbf16>
    %cst_23 = arith.constant dense<0.000000e+00> : vector<256x64xf32>
    %22 = tpu.matmul %1, %21, %cst_23 {dimension_numbers = #tpu.dot_dimension_numbers<[1], [0], [0], [1], [0, 0, 1, 1], [], []>} : vector<256x128xbf16>, vector<128x64xbf16>, vector<256x64xf32> -> vector<256x64xf32>
    %23 = arith.addf %20, %22 : vector<256x64xf32>
    %c0_24 = arith.constant 0 : index
    %c0_25 = arith.constant 0 : index
    %24 = vector.load %arg5[%c0_24, %c0_25] : memref<1x64xf32, #tpu.memory_space<vmem>>, vector<1x64xf32>
    %25 = vector.broadcast %24 : vector<1x64xf32> to vector<256x64xf32>
    %26 = arith.addf %23, %25 : vector<256x64xf32>
    %cst_26 = arith.constant 0.000000e+00 : f32
    %27 = vector.broadcast %cst_26 : f32 to vector<256x64xf32>
    %28 = arith.maximumf %26, %27 : vector<256x64xf32>
    %c0_27 = arith.constant 0 : index
    %c0_28 = arith.constant 0 : index
    %29 = vector.load %arg6[%c0_27, %c0_28] : memref<1x64xf32, #tpu.memory_space<vmem>>, vector<1x64xf32>
    %30 = vector.broadcast %29 : vector<1x64xf32> to vector<256x64xf32>
    %31 = arith.mulf %28, %30 : vector<256x64xf32>
    %cst_29 = arith.constant dense<0.000000e+00> : vector<256xf32>
    %32 = vector.multi_reduction <add>, %31, %cst_29 [1] : vector<256x64xf32> to vector<256xf32>
    %33 = vector.shape_cast %32 : vector<256xf32> to vector<256x1xf32>
    %c0_30 = arith.constant 0 : index
    %c0_31 = arith.constant 0 : index
    %34 = vector.load %arg7[%c0_30, %c0_31] : memref<1x1xf32, #tpu.memory_space<vmem>>, vector<1x1xf32>
    %35 = vector.broadcast %34 : vector<1x1xf32> to vector<256x1xf32>
    %36 = arith.addf %33, %35 : vector<256x1xf32>
    %37 = arith.negf %36 : vector<256x1xf32>
    %38 = math.exp %37 : vector<256x1xf32>
    %cst_32 = arith.constant 1.000000e+00 : f32
    %39 = vector.broadcast %cst_32 : f32 to vector<256x1xf32>
    %40 = arith.addf %39, %38 : vector<256x1xf32>
    %41 = arith.divf %39, %40 : vector<256x1xf32>
    %42 = vector.broadcast %41 : vector<256x1xf32> to vector<256x128xf32>
    %43 = arith.mulf %0, %42 : vector<256x128xf32>
    %c0_33 = arith.constant 0 : index
    %c0_34 = arith.constant 0 : index
    %44 = vector.load %arg8[%c0_33, %c0_34] : memref<256x128xf32, #tpu.memory_space<vmem>>, vector<256x128xf32>
    tpu.vector_store %arg8[%c0_33, %c0_34], %43 {strides = array<i32>} : memref<256x128xf32, #tpu.memory_space<vmem>>, vector<256x128xf32>,
    return
  }
  func.func @transform_0(%arg0: i32) -> (i32, i32, i32) {
    %c0_i32 = arith.constant 0 : i32
    %c0_i32_0 = arith.constant 0 : i32
    %c0_i32_1 = arith.constant 0 : i32
    return %c0_i32, %arg0, %c0_i32_0 : i32, i32, i32
  }
  func.func @transform_1(%arg0: i32) -> (i32, i32) {
    %c0_i32 = arith.constant 0 : i32
    %c0_i32_0 = arith.constant 0 : i32
    return %arg0, %c0_i32 : i32, i32
  }
  func.func @transform_2(%arg0: i32) -> (i32, i32) {
    %c0_i32 = arith.constant 0 : i32
    %c0_i32_0 = arith.constant 0 : i32
    %c0_i32_1 = arith.constant 0 : i32
    return %c0_i32, %c0_i32_0 : i32, i32
  }
  func.func @transform_3(%arg0: i32) -> (i32, i32) {
    %c0_i32 = arith.constant 0 : i32
    %c0_i32_0 = arith.constant 0 : i32
    %c0_i32_1 = arith.constant 0 : i32
    return %c0_i32, %c0_i32_0 : i32, i32
  }
  func.func @transform_4(%arg0: i32) -> (i32, i32) {
    %c0_i32 = arith.constant 0 : i32
    %c0_i32_0 = arith.constant 0 : i32
    %c0_i32_1 = arith.constant 0 : i32
    return %c0_i32, %c0_i32_0 : i32, i32
  }
  func.func @transform_5(%arg0: i32) -> (i32, i32) {
    %c0_i32 = arith.constant 0 : i32
    %c0_i32_0 = arith.constant 0 : i32
    %c0_i32_1 = arith.constant 0 : i32
    return %c0_i32, %c0_i32_0 : i32, i32
  }
  func.func @transform_6(%arg0: i32) -> (i32, i32) {
    %c0_i32 = arith.constant 0 : i32
    %c0_i32_0 = arith.constant 0 : i32
    %c0_i32_1 = arith.constant 0 : i32
    return %c0_i32, %c0_i32_0 : i32, i32
  }
  func.func @transform_7(%arg0: i32) -> (i32, i32) {
    %c0_i32 = arith.constant 0 : i32
    %c0_i32_0 = arith.constant 0 : i32
    return %arg0, %c0_i32 : i32, i32
  }
}

</mosaic_0001>

<bundles_post_ra>
// kernel: _lambda_.1
= control target key start
LH: loop header
LB: loop body
LE: loop exit
PB: predicated region body
PF: predicated region fallthrough
CT: control target
= control target key end

     0   :  { %s5290_s0 = inlined_call_operand.vmem [shape: bf16[4,512,64], index: 0, kind: input, shape index: {}]   ;;  %s5291_s1 = inlined_call_operand.vmem [shape: f32[512,128], index: 1, kind: input, shape index: {}]   ;;  %s5292_s2 = inlined_call_operand.vmem [shape: bf16[64,64], index: 2, kind: input, shape index: {}]   ;;  %s5293_s3 = inlined_call_operand.vmem [shape: bf16[128,64], index: 3, kind: input, shape index: {}]   ;;  %s5294_s4 = inlined_call_operand.vmem [shape: f32[1,64], index: 4, kind: input, shape index: {}]   ;;  %s5295_s5 = inlined_call_operand.vmem [shape: f32[1,64], index: 5, kind: input, shape index: {}]   ;;  %s5296_s6 = inlined_call_operand.<no memory space> [shape: f32[1,1], index: 6, kind: input, shape index: {}]   ;;  %s5297_s7 = inlined_call_operand.hbm [shape: f32[512,128], index: 7, kind: output, shape index: {}]  }
   0x1   :  { %v12_v0 = vstv %s5296_s6 }
   0x2   :  { %13 = vst [vmem:[#allocation2] sm:$0x1] %v12_v0 }
   0x3   :  { %14 = vsyncpa [#allocation5], 0 }
   0x4   :  { %16 = vsyncpa [#allocation5 + $0x1], 0  ;;  %s4330_s26 = smov 0   ;;  %s4332_s27 = smov 0  }
   0x5   :  { %s4334_s28 = smov 0   ;;  %s4336_s29 = smov 0  }
   0x6 LB: > { %s4351_s6 = sadd.s32 4294967295, %s4281_s29   ;;  %s3332_s30 = sadd.s32 4294967294, %s4281_s29   ;;  %s4281_s29 = sphi %s4336_s29, %s5361_s29   ;;  %s4277_s28 = sphi %s4334_s28, %s5360_s28   ;;  %s4273_s27 = sphi %s4332_s27, %s5359_s27   ;;  %s4269_s26 = sphi %s4330_s26, %s5358_s26  }
   0x7   : > { %s4355_s8 = sadd.s32 1, %s4281_s29   ;;  %s29_s9 = sadd.s32 1, %s4277_s28 }
   0x8   : > { %s26_s10 = ssub.s32 %s4281_s29, %s4355_s8  ;;  %p36_p0 = scmp.ne.s32.totalorder %s4277_s28, %s4273_s27 }
   0x9   : > { %p27_p1 = scmp.eq.s32.totalorder %s26_s10, 0  ;;  %p37_p2 = scmp.eq.s32.totalorder %s4281_s29, 0 }
   0xa   : > { %p197_p3 = scmp.eq.s32.totalorder %s4351_s6, 1  ;;  %p202_p4 = scmp.ne.s32.totalorder %s4273_s27, %s4269_s26 }
   0xb   : > { %s4367_s11 = scalar_select %p27_p1, %s4277_s28, %s29_s9  }
   0xc   : > { %p38_p5 = por %p37_p2, %p36_p0  ;;  %p4369_p6 = por %p197_p3, %p36_p0 }
   0xd   : > { %p203_p7 = scmp.eq.s32.totalorder %s3332_s30, 1  ;;  %p3334_p9 = scmp.ge.s32.totalorder %s4281_s29, 2 }
   0xf   : > { %p4373_p8 = por %p203_p7, %p202_p4  ;;  %234 = sbr.rel (%p3334_p9) target bundleno = 56 (0x38), region = 36 }
  0x14   : > { %237 = sbr.rel (!%p38_p5) target bundleno = 56 (0x38), region = 40  ;;  %s239_s14 = sand.u32 (%p38_p5), 1, %s4277_s28  }
  0x15   : > { %s3619_s15 = sshll.u32 (%p38_p5), %s4281_s29, 7  ;;  %s3335_s16 = sshll.u32 (%p38_p5), %s239_s14, 9 }
  0x16   : > { %s4385_s19 = scalar_lea.vmem (%p38_p5), %s5290_s0, %s3619_s15  ;;  %s4390_s20 = scalar_lea.vmem (%p38_p5), [#allocation3], %s3335_s16 }
  0x17   : > { %v261_v1 = vld [vmem:[%s4385_s19] sm:$0xff] (%p38_p5)   ;;  %v265_v2 = vld [vmem:[%s4385_s19 + $0x8] sm:$0xff] (%p38_p5)   ;;  %v269_v3 = vld [vmem:[%s4385_s19 + $0x10] sm:$0xff] (%p38_p5)  }
  0x18   : > { %262 = vst [vmem:[%s4390_s20] sm:$0xff] (%p38_p5), %v261_v1   ;;  %266 = vst [vmem:[%s4390_s20 + $0x8] sm:$0xff] (%p38_p5), %v265_v2   ;;  %v273_v4 = vld [vmem:[%s4385_s19 + $0x18] sm:$0xff] (%p38_p5)   ;;  %v277_v5 = vld [vmem:[%s4385_s19 + $0x20] sm:$0xff] (%p38_p5)  }
  0x19   : > { %270 = vst [vmem:[%s4390_s20 + $0x10] sm:$0xff] %v269_v3   ;;  %v281_v6 = vld [vmem:[%s4385_s19 + $0x28] sm:$0xff]   ;;  %274 = vst [vmem:[%s4390_s20 + $0x18] sm:$0xff] %v273_v4   ;;  %v285_v7 = vld [vmem:[%s4385_s19 + $0x30] sm:$0xff]  }
  0x1a   : > { %278 = vst [vmem:[%s4390_s20 + $0x20] sm:$0xff] %v277_v5   ;;  %282 = vst [vmem:[%s4390_s20 + $0x28] sm:$0xff] %v281_v6   ;;  %v289_v8 = vld [vmem:[%s4385_s19 + $0x38] sm:$0xff]   ;;  %v293_v9 = vld [vmem:[%s4385_s19 + $0x40] sm:$0xff]  }
  0x1b   : > { %286 = vst [vmem:[%s4390_s20 + $0x30] sm:$0xff] %v285_v7   ;;  %290 = vst [vmem:[%s4390_s20 + $0x38] sm:$0xff] %v289_v8   ;;  %v297_v10 = vld [vmem:[%s4385_s19 + $0x48] sm:$0xff]   ;;  %v301_v11 = vld [vmem:[%s4385_s19 + $0x50] sm:$0xff]  }
  0x1c   : > { %294 = vst [vmem:[%s4390_s20 + $0x40] sm:$0xff] %v293_v9   ;;  %v305_v12 = vld [vmem:[%s4385_s19 + $0x58] sm:$0xff]   ;;  %298 = vst [vmem:[%s4390_s20 + $0x48] sm:$0xff] %v297_v10   ;;  %v309_v13 = vld [vmem:[%s4385_s19 + $0x60] sm:$0xff]  }
  0x1d   : > { %302 = vst [vmem:[%s4390_s20 + $0x50] sm:$0xff] %v301_v11   ;;  %306 = vst [vmem:[%s4390_s20 + $0x58] sm:$0xff] %v305_v12   ;;  %v313_v14 = vld [vmem:[%s4385_s19 + $0x68] sm:$0xff]   ;;  %v317_v15 = vld [vmem:[%s4385_s19 + $0x70] sm:$0xff]  }
  0x1e   : > { %310 = vst [vmem:[%s4390_s20 + $0x60] sm:$0xff] %v309_v13   ;;  %314 = vst [vmem:[%s4390_s20 + $0x68] sm:$0xff] %v313_v14   ;;  %v321_v16 = vld [vmem:[%s4385_s19 + $0x78] sm:$0xff]   ;;  %v325_v17 = vld [vmem:[%s4385_s19 + $0x100] sm:$0xff]  }
  0x1f   : > { %318 = vst [vmem:[%s4390_s20 + $0x70] sm:$0xff] %v317_v15   ;;  %v329_v18 = vld [vmem:[%s4385_s19 + $0x108] sm:$0xff]   ;;  %322 = vst [vmem:[%s4390_s20 + $0x78] sm:$0xff] %v321_v16   ;;  %v333_v19 = vld [vmem:[%s4385_s19 + $0x110] sm:$0xff]  }
  0x20   : > { %326 = vst [vmem:[%s4390_s20 + $0x80] sm:$0xff] %v325_v17   ;;  %330 = vst [vmem:[%s4390_s20 + $0x88] sm:$0xff] %v329_v18   ;;  %v337_v20 = vld [vmem:[%s4385_s19 + $0x118] sm:$0xff]   ;;  %v341_v21 = vld [vmem:[%s4385_s19 + $0x120] sm:$0xff]  }
  0x21   : > { %334 = vst [vmem:[%s4390_s20 + $0x90] sm:$0xff] %v333_v19   ;;  %338 = vst [vmem:[%s4390_s20 + $0x98] sm:$0xff] %v337_v20   ;;  %v345_v22 = vld [vmem:[%s4385_s19 + $0x128] sm:$0xff]   ;;  %v349_v23 = vld [vmem:[%s4385_s19 + $0x130] sm:$0xff]  }
  0x22   : > { %342 = vst [vmem:[%s4390_s20 + $0xa0] sm:$0xff] %v341_v21   ;;  %v353_v24 = vld [vmem:[%s4385_s19 + $0x138] sm:$0xff]   ;;  %346 = vst [vmem:[%s4390_s20 + $0xa8] sm:$0xff] %v345_v22   ;;  %v357_v25 = vld [vmem:[%s4385_s19 + $0x140] sm:$0xff]  }
  0x23   : > { %350 = vst [vmem:[%s4390_s20 + $0xb0] sm:$0xff] %v349_v23   ;;  %354 = vst [vmem:[%s4390_s20 + $0xb8] sm:$0xff] %v353_v24   ;;  %v361_v26 = vld [vmem:[%s4385_s19 + $0x148] sm:$0xff]   ;;  %v365_v27 = vld [vmem:[%s4385_s19 + $0x150] sm:$0xff]  }
  0x24   : > { %358 = vst [vmem:[%s4390_s20 + $0xc0] sm:$0xff] %v357_v25   ;;  %362 = vst [vmem:[%s4390_s20 + $0xc8] sm:$0xff] %v361_v26   ;;  %v369_v28 = vld [vmem:[%s4385_s19 + $0x158] sm:$0xff]   ;;  %v373_v29 = vld [vmem:[%s4385_s19 + $0x160] sm:$0xff]  }
  0x25   : > { %366 = vst [vmem:[%s4390_s20 + $0xd0] sm:$0xff] %v365_v27   ;;  %v377_v30 = vld [vmem:[%s4385_s19 + $0x168] sm:$0xff]   ;;  %370 = vst [vmem:[%s4390_s20 + $0xd8] sm:$0xff] %v369_v28   ;;  %v381_v31 = vld [vmem:[%s4385_s19 + $0x170] sm:$0xff]  }
  0x26   : > { %374 = vst [vmem:[%s4390_s20 + $0xe0] sm:$0xff] %v373_v29   ;;  %378 = vst [vmem:[%s4390_s20 + $0xe8] sm:$0xff] %v377_v30   ;;  %v385_v32 = vld [vmem:[%s4385_s19 + $0x178] sm:$0xff]   ;;  %v389_v33 = vld [vmem:[%s4385_s19 + $0x200] sm:$0xff]  }
  0x27   : > { %382 = vst [vmem:[%s4390_s20 + $0xf0] sm:$0xff] %v381_v31   ;;  %386 = vst [vmem:[%s4390_s20 + $0xf8] sm:$0xff] %v385_v32   ;;  %v393_v34 = vld [vmem:[%s4385_s19 + $0x208] sm:$0xff]   ;;  %v397_v35 = vld [vmem:[%s4385_s19 + $0x210] sm:$0xff]  }
  0x28   : > { %390 = vst [vmem:[%s4390_s20 + $0x100] sm:$0xff] %v389_v33   ;;  %v401_v36 = vld [vmem:[%s4385_s19 + $0x218] sm:$0xff]   ;;  %394 = vst [vmem:[%s4390_s20 + $0x108] sm:$0xff] %v393_v34   ;;  %v405_v37 = vld [vmem:[%s4385_s19 + $0x220] sm:$0xff]  }
  0x29   : > { %398 = vst [vmem:[%s4390_s20 + $0x110] sm:$0xff] %v397_v35   ;;  %402 = vst [vmem:[%s4390_s20 + $0x118] sm:$0xff] %v401_v36   ;;  %v409_v38 = vld [vmem:[%s4385_s19 + $0x228] sm:$0xff]   ;;  %v413_v39 = vld [vmem:[%s4385_s19 + $0x230] sm:$0xff]  }
  0x2a   : > { %406 = vst [vmem:[%s4390_s20 + $0x120] sm:$0xff] %v405_v37   ;;  %410 = vst [vmem:[%s4390_s20 + $0x128] sm:$0xff] %v409_v38   ;;  %v417_v40 = vld [vmem:[%s4385_s19 + $0x238] sm:$0xff]   ;;  %v421_v41 = vld [vmem:[%s4385_s19 + $0x240] sm:$0xff]  }
  0x2b   : > { %414 = vst [vmem:[%s4390_s20 + $0x130] sm:$0xff] %v413_v39   ;;  %v425_v42 = vld [vmem:[%s4385_s19 + $0x248] sm:$0xff]   ;;  %418 = vst [vmem:[%s4390_s20 + $0x138] sm:$0xff] %v417_v40   ;;  %v429_v43 = vld [vmem:[%s4385_s19 + $0x250] sm:$0xff]  }
  0x2c   : > { %422 = vst [vmem:[%s4390_s20 + $0x140] sm:$0xff] %v421_v41   ;;  %426 = vst [vmem:[%s4390_s20 + $0x148] sm:$0xff] %v425_v42   ;;  %v433_v44 = vld [vmem:[%s4385_s19 + $0x258] sm:$0xff]   ;;  %v437_v45 = vld [vmem:[%s4385_s19 + $0x260] sm:$0xff]  }
  0x2d   : > { %430 = vst [vmem:[%s4390_s20 + $0x150] sm:$0xff] %v429_v43   ;;  %434 = vst [vmem:[%s4390_s20 + $0x158] sm:$0xff] %v433_v44   ;;  %v441_v46 = vld [vmem:[%s4385_s19 + $0x268] sm:$0xff]   ;;  %v445_v47 = vld [vmem:[%s4385_s19 + $0x270] sm:$0xff]  }
  0x2e   : > { %438 = vst [vmem:[%s4390_s20 + $0x160] sm:$0xff] %v437_v45   ;;  %v449_v48 = vld [vmem:[%s4385_s19 + $0x278] sm:$0xff]   ;;  %442 = vst [vmem:[%s4390_s20 + $0x168] sm:$0xff] %v441_v46   ;;  %v453_v49 = vld [vmem:[%s4385_s19 + $0x300] sm:$0xff]  }
  0x2f   : > { %446 = vst [vmem:[%s4390_s20 + $0x170] sm:$0xff] %v445_v47   ;;  %450 = vst [vmem:[%s4390_s20 + $0x178] sm:$0xff] %v449_v48   ;;  %v457_v50 = vld [vmem:[%s4385_s19 + $0x308] sm:$0xff]   ;;  %v461_v51 = vld [vmem:[%s4385_s19 + $0x310] sm:$0xff]  }
  0x30   : > { %454 = vst [vmem:[%s4390_s20 + $0x180] sm:$0xff] %v453_v49   ;;  %458 = vst [vmem:[%s4390_s20 + $0x188] sm:$0xff] %v457_v50   ;;  %v465_v52 = vld [vmem:[%s4385_s19 + $0x318] sm:$0xff]   ;;  %v469_v53 = vld [vmem:[%s4385_s19 + $0x320] sm:$0xff]  }
  0x31   : > { %462 = vst [vmem:[%s4390_s20 + $0x190] sm:$0xff] %v461_v51   ;;  %v473_v54 = vld [vmem:[%s4385_s19 + $0x328] sm:$0xff]   ;;  %466 = vst [vmem:[%s4390_s20 + $0x198] sm:$0xff] %v465_v52   ;;  %v477_v55 = vld [vmem:[%s4385_s19 + $0x330] sm:$0xff]  }
  0x32   : > { %470 = vst [vmem:[%s4390_s20 + $0x1a0] sm:$0xff] %v469_v53   ;;  %474 = vst [vmem:[%s4390_s20 + $0x1a8] sm:$0xff] %v473_v54   ;;  %v481_v56 = vld [vmem:[%s4385_s19 + $0x338] sm:$0xff]   ;;  %v485_v57 = vld [vmem:[%s4385_s19 + $0x340] sm:$0xff]  }
  0x33   : > { %478 = vst [vmem:[%s4390_s20 + $0x1b0] sm:$0xff] %v477_v55   ;;  %482 = vst [vmem:[%s4390_s20 + $0x1b8] sm:$0xff] %v481_v56   ;;  %v489_v58 = vld [vmem:[%s4385_s19 + $0x348] sm:$0xff]   ;;  %v493_v59 = vld [vmem:[%s4385_s19 + $0x350] sm:$0xff]  }
  0x34   : > { %486 = vst [vmem:[%s4390_s20 + $0x1c0] sm:$0xff] %v485_v57   ;;  %v497_v60 = vld [vmem:[%s4385_s19 + $0x358] sm:$0xff]   ;;  %490 = vst [vmem:[%s4390_s20 + $0x1c8] sm:$0xff] %v489_v58   ;;  %v501_v61 = vld [vmem:[%s4385_s19 + $0x360] sm:$0xff]  }
  0x35   : > { %494 = vst [vmem:[%s4390_s20 + $0x1d0] sm:$0xff] %v493_v59   ;;  %498 = vst [vmem:[%s4390_s20 + $0x1d8] sm:$0xff] %v497_v60   ;;  %v505_v62 = vld [vmem:[%s4385_s19 + $0x368] sm:$0xff]   ;;  %v509_v63 = vld [vmem:[%s4385_s19 + $0x370] sm:$0xff]  }
  0x36   : > { %502 = vst [vmem:[%s4390_s20 + $0x1e0] sm:$0xff] %v501_v61   ;;  %506 = vst [vmem:[%s4390_s20 + $0x1e8] sm:$0xff] %v505_v62   ;;  %v513_v0 = vld [vmem:[%s4385_s19 + $0x378] sm:$0xff]  }
  0x37   : > { %510 = vst [vmem:[%s4390_s20 + $0x1f0] sm:$0xff] %v509_v63   ;;  %514 = vst [vmem:[%s4390_s20 + $0x1f8] sm:$0xff] %v513_v0  }
  0x38 PF: > { %p3338_p10 = scmp.ge.s32.totalorder %s4281_s29, 1  ;;  %p804_p11 = scmp.lt.s32.totalorder %s4281_s29, 3 }
  0x3a   : > { %p805_p12 = pnand %p3338_p10, %p804_p11 }
  0x3c   : > { %808 = sbr.rel (%p805_p12) target bundleno = 767 (0x2ff), region = 85 }
  0x41   : > { %v4522_v1 = vld [vmem:[%s5292_s2 + $0x18] sm:$0xff]   ;;  %s4525_s23 = sand.u32 1, %s4273_s27   ;;  %v4530_v2 = vld [vmem:[%s5292_s2 + $0x10] sm:$0xff]   ;;  %v4540_v3 = vld [vmem:[%s5292_s2 + $0x8] sm:$0xff]   ;;  %vm1048_vm0 = vcmask 523264   ;;  %s3341_s20 = sshll.u32 %s4351_s6, 5 }
  0x42   : > { %s3339_s30 = sshll.u32 %s4525_s23, 9  ;;  %3725 = vmatprep.subr.bf16.mxu0 %v4522_v1  ;;  %3933 = vmatprep.subr.bf16.mxu1 %v4522_v1  ;;  %v4556_v6 = vld [vmem:[%s5292_s2] sm:$0xff]   ;;  %v4009_v17 = vld [vmem:[%s5293_s3 + $0x38] sm:$0xff]   ;;  %v4014_v28 = vld [vmem:[%s5293_s3 + $0x30] sm:$0xff]   ;;  %p849_p13 = scmp.lt.s32.totalorder %s3341_s20, 63 }
  0x43   : > { %3726 = vmatpush3.bf16.msra.mxu0 %v4522_v1  ;;  %3937 = vmatpush3.bf16.msra.mxu1 %v4522_v1  ;;  %s4544_s14 = scalar_lea.vmem [#allocation3], %s3339_s30  ;;  %v4019_v30 = vld [vmem:[%s5293_s3 + $0x28] sm:$0xff]   ;;  %v4024_v34 = vld [vmem:[%s5293_s3 + $0x20] sm:$0xff]   ;;  %v4029_v36 = vld [vmem:[%s5293_s3 + $0x18] sm:$0xff]   ;;  %s3340_s15 = sshll.u32 %s4525_s23, 8 }
  0x44   : > { %3727 = vmatprep.subr.bf16.mxu0 %v4530_v2  ;;  %3934 = vmatprep.subr.bf16.mxu1 %v4530_v2  ;;  %v3989_v4 = vld [vmem:[%s4544_s14] sm:$0xff]   ;;  %v3991_v7 = vld [vmem:[%s4544_s14 + $0x8] sm:$0xff]   ;;  %v3993_v9 = vld [vmem:[%s4544_s14 + $0x10] sm:$0xff]   ;;  %s5363_s20 = smov (!%p849_p13, %s3341_s20), 63  ;;  %s5175_s16 = scalar_lea.vmem [#allocation4], %s3340_s15 }
  0x45   : > { %v3990_v5 = vld [vmem:[%s4544_s14 + $0x40] sm:$0xff]   ;;  %3733 = vmatprep.mubr.msk.bf16.mxu0 %vm1048_vm0, %v3989_v4  ;;  %v3992_v8 = vld [vmem:[%s4544_s14 + $0x48] sm:$0xff]   ;;  %v3994_v10 = vld [vmem:[%s4544_s14 + $0x50] sm:$0xff]   ;;  %s3342_s21 = sshll.u32 %s5363_s20, 3  ;;  %s3620_s17 = sshll.u32 %s4351_s6, 12 }
  0x46   : > { %3749 = vmatprep.mubr.msk.bf16.mxu1 %vm1048_vm0, %v3990_v5  ;;  %v3995_v11 = vld [vmem:[%s4544_s14 + $0x18] sm:$0xff]   ;;  %v3997_v13 = vld [vmem:[%s4544_s14 + $0x20] sm:$0xff]   ;;  %v3999_v15 = vld [vmem:[%s4544_s14 + $0x28] sm:$0xff]   ;;  %s4701_s25 = scalar_lea.vmem %s5291_s1, %s3342_s21  ;;  %s3252_s18 = sshll.u32 %s5175_s16, 4  ;;  %s5245_s18 = int_to_ptr.vmem [resolvable:$true] %s3252_s18 }
  0x47   : > { %3728 = vmatpush3.bf16.msra.mxu0 %v4530_v2  ;;  %3938 = vmatpush3.bf16.msra.mxu1 %v4530_v2  ;;  %v3996_v12 = vld [vmem:[%s4544_s14 + $0x58] sm:$0xff]   ;;  %v3998_v14 = vld [vmem:[%s4544_s14 + $0x60] sm:$0xff]   ;;  %v4000_v16 = vld [vmem:[%s4544_s14 + $0x68] sm:$0xff]   ;;  %s5243_s21 = scalar_lea.hbm %s5297_s7, %s3620_s17  ;;  %s3239_s22 = scalar_lea.sflag [#allocation5], %s4525_s23 }
  0x48   : > { %3729 = vmatprep.subr.bf16.mxu0 %v4540_v3  ;;  %3935 = vmatprep.subr.bf16.mxu1 %v4540_v3  ;;  %v4001_v18 = vld [vmem:[%s4544_s14 + $0x30] sm:$0xff]   ;;  %v4003_v20 = vld [vmem:[%s4544_s14 + $0x38] sm:$0xff]   ;;  %v4005_v22 = vld [vmem:[%s4544_s14 + $0x80] sm:$0xff]   ;;  %s4221_s24 = scalar_lea.vmem %s5245_s18, 4096  ;;  %s4284_s6 = smov [#allocation4]  }
  0x49   : > { %v4002_v19 = vld [vmem:[%s4544_s14 + $0x70] sm:$0xff]   ;;  %v4004_v21 = vld [vmem:[%s4544_s14 + $0x78] sm:$0xff]   ;;  %v4006_v23 = vld [vmem:[%s4544_s14 + $0x100] sm:$0xff]   ;;  %p4222_p0 = scmp.ne.s32.totalorder %s5245_s18, %s4221_s24 }
  0x4a   : > { %v4007_v24 = vld [vmem:[%s4544_s14 + $0x88] sm:$0xff]   ;;  %v4010_v26 = vld [vmem:[%s4544_s14 + $0x90] sm:$0xff]   ;;  %v4012_v29 = vld [vmem:[%s4544_s14 + $0x98] sm:$0xff]  }
  0x4b   : > { %3730 = vmatpush3.bf16.msra.mxu0 %v4540_v3  ;;  %3939 = vmatpush3.bf16.msra.mxu1 %v4540_v3  ;;  %v4008_v25 = vld [vmem:[%s4544_s14 + $0x108] sm:$0xff]   ;;  %v4011_v27 = vld [vmem:[%s4544_s14 + $0x110] sm:$0xff]   ;;  %v4013_v31 = vld [vmem:[%s4544_s14 + $0x118] sm:$0xff]   ;;  %p4223_p1 = pnand %p4222_p0, %p4369_p6 }
  0x4c   : > { %3731 = vmatprep.subr.bf16.mxu0 %v4556_v6  ;;  %3936 = vmatprep.subr.bf16.mxu1 %v4556_v6  ;;  %v4015_v32 = vld [vmem:[%s4544_s14 + $0xa0] sm:$0xff]   ;;  %v4017_v35 = vld [vmem:[%s4544_s14 + $0xa8] sm:$0xff]   ;;  %v4020_v38 = vld [vmem:[%s4544_s14 + $0xb0] sm:$0xff]  }
  0x4d   : > { %v4016_v33 = vld [vmem:[%s4544_s14 + $0x120] sm:$0xff]   ;;  %v4018_v37 = vld [vmem:[%s4544_s14 + $0x128] sm:$0xff]   ;;  %v4021_v39 = vld [vmem:[%s4544_s14 + $0x130] sm:$0xff]   ;;  %p4224_p2 = pneg %p4223_p1 }
  0x4e   : > { %v4034_v40 = vld [vmem:[%s5293_s3 + $0x10] sm:$0xff]   ;;  %v4022_v41 = vld [vmem:[%s4544_s14 + $0xb8] sm:$0xff]   ;;  %v4039_v43 = vld [vmem:[%s5293_s3 + $0x8] sm:$0xff]  }
  0x4f   : > { %3732 = vmatpush3.bf16.msra.mxu0 %v4556_v6  ;;  %3940 = vmatpush3.bf16.msra.mxu1 %v4556_v6  ;;  %v4023_v42 = vld [vmem:[%s4544_s14 + $0x138] sm:$0xff]   ;;  %v4025_v44 = vld [vmem:[%s4544_s14 + $0xc0] sm:$0xff]   ;;  %v4027_v47 = vld [vmem:[%s4544_s14 + $0xc8] sm:$0xff]  }
  0x50   : > { %3765 = vmatprep.subr.bf16.mxu1 %v4522_v1  ;;  %3805 = vmatprep.subr.bf16.mxu0 %v4522_v1  ;;  %v4026_v45 = vld [vmem:[%s4544_s14 + $0x140] sm:$0xff]   ;;  %v4028_v48 = vld [vmem:[%s4544_s14 + $0x148] sm:$0xff]   ;;  %v4030_v49 = vld [vmem:[%s4544_s14 + $0xd0] sm:$0xff]  }
  0x51   : > { %v4044_v46 = vld [vmem:[%s5293_s3] sm:$0xff]   ;;  %v4031_v50 = vld [vmem:[%s4544_s14 + $0x150] sm:$0xff]   ;;  %v4037_v55 = vld [vmem:[%s4544_s14 + $0xe8] sm:$0xff]  }
  0x52   : > { %3734 = vmatmul.mubr.msk.bf16.vlgmr.msra.gmra.mxu0 %vm1048_vm0, %v3991_v7  ;;  %3750 = vmatmul.mubr.msk.bf16.vlgmr.msra.gmra.mxu1 %vm1048_vm0, %v3992_v8  ;;  %v4032_v51 = vld [vmem:[%s4544_s14 + $0xd8] sm:$0xff]   ;;  %v4035_v53 = vld [vmem:[%s4544_s14 + $0xe0] sm:$0xff]   ;;  %v4038_v56 = vld [vmem:[%s4544_s14 + $0x168] sm:$0xff]  }
  0x53   : > { %3766 = vmatpush3.bf16.msra.mxu1 %v4522_v1  ;;  %3806 = vmatpush3.bf16.msra.mxu0 %v4522_v1  ;;  %v4033_v52 = vld [vmem:[%s4544_s14 + $0x158] sm:$0xff]   ;;  %v4036_v54 = vld [vmem:[%s4544_s14 + $0x160] sm:$0xff]   ;;  %v4040_v57 = vld [vmem:[%s4544_s14 + $0xf0] sm:$0xff]  }
  0x54   : > { %3737 = vmatprep.mubr.msk.bf16.mxu0 %vm1048_vm0, %v3993_v9  ;;  %3753 = vmatprep.mubr.msk.bf16.mxu1 %vm1048_vm0, %v3994_v10  ;;  %v4041_v58 = vld [vmem:[%s4544_s14 + $0x170] sm:$0xff]   ;;  %v856_v59 = vld [vmem:[%s4701_s25] sm:$0xff]  ;;  %v857_v60 = vld [vmem:[%s4701_s25 + $0x8] sm:$0xff] }
  0x55   : > { %3767 = vmatprep.subr.bf16.mxu1 %v4530_v2  ;;  %3807 = vmatprep.subr.bf16.mxu0 %v4530_v2  ;;  %v4042_v61 = vld [vmem:[%s4544_s14 + $0xf8] sm:$0xff]   ;;  %v4045_v63 = vld [vmem:[%s4544_s14 + $0x180] sm:$0xff]   ;;  %v888_v0 = vpack.c.bf16 %v857_v60, %v856_v59  ;;  %v4046_v5 = vld [vmem:[%s4544_s14 + $0x188] sm:$0xff]  }
  0x56   : > { %v4043_v62 = vld [vmem:[%s4544_s14 + $0x178] sm:$0xff]   ;;  %v861_v4 = vld [vmem:[%s4701_s25 + $0x28] sm:$0xff]  ;;  %v4047_v7 = vld [vmem:[%s4544_s14 + $0x190] sm:$0xff]  }
  0x57   : > { %3768 = vmatpush3.bf16.msra.mxu1 %v4530_v2  ;;  %3808 = vmatpush3.bf16.msra.mxu0 %v4530_v2  ;;  %v862_v9 = vld [vmem:[%s4701_s25 + $0x30] sm:$0xff]  ;;  %v863_v10 = vld [vmem:[%s4701_s25 + $0x38] sm:$0xff] }
  0x58   : > { %3769 = vmatprep.subr.bf16.mxu1 %v4540_v3  ;;  %3809 = vmatprep.subr.bf16.mxu0 %v4540_v3  ;;  %v4060_v59 = vld [vmem:[%s4544_s14 + $0x1f8] sm:$0xff]  }
  0x5a   : > { %3738 = vmatmul.mubr.msk.bf16.gmra.mxu0 %vm1048_vm0, %v3995_v11  ;;  %3754 = vmatmul.mubr.msk.bf16.gmra.mxu1 %vm1048_vm0, %v3996_v12  ;;  %v864_v11 = vld [vmem:[%s4701_s25 + $0x40] sm:$0xff]  ;;  %v865_v12 = vld [vmem:[%s4701_s25 + $0x48] sm:$0xff] }
  0x5b   : > { %3741 = vmatprep.mubr.msk.bf16.mxu0 %vm1048_vm0, %v3997_v13  ;;  %3757 = vmatprep.mubr.msk.bf16.mxu1 %vm1048_vm0, %v3998_v14  ;;  %v4048_v13 = vld [vmem:[%s4544_s14 + $0x198] sm:$0xff]   ;;  %v891_v14 = vpack.c.bf16 %v863_v10, %v862_v9 }
  0x5c   : > { %3770 = vmatpush3.bf16.msra.mxu1 %v4540_v3  ;;  %3810 = vmatpush3.bf16.msra.mxu0 %v4540_v3 }
  0x5d   : > { %3771 = vmatprep.subr.bf16.mxu1 %v4556_v6  ;;  %3811 = vmatprep.subr.bf16.mxu0 %v4556_v6 }
  0x60   : > { %3772 = vmatpush3.bf16.msra.mxu1 %v4556_v6  ;;  %3812 = vmatpush3.bf16.msra.mxu0 %v4556_v6 }
  0x61   : > { %3845 = vmatprep.subr.bf16.mxu1 %v4522_v1  ;;  %3885 = vmatprep.subr.bf16.mxu0 %v4009_v17 }
  0x62   : > { %3742 = vmatmul.mubr.msk.bf16.gmra.mxu0 %vm1048_vm0, %v3999_v15  ;;  %3758 = vmatmul.mubr.msk.bf16.gmra.mxu1 %vm1048_vm0, %v4000_v16  ;;  %v4049_v15 = vld [vmem:[%s4544_s14 + $0x1a0] sm:$0xff]   ;;  %v892_v16 = vpack.c.bf16 %v865_v12, %v864_v11 }
  0x63   : > { %3745 = vmatprep.mubr.msk.bf16.mxu0 %vm1048_vm0, %v4001_v18  ;;  %3761 = vmatprep.mubr.msk.bf16.mxu1 %vm1048_vm0, %v4002_v19  ;;  %v867_v18 = vld [vmem:[%s4701_s25 + $0x58] sm:$0xff]  ;;  %v868_v19 = vld [vmem:[%s4701_s25 + $0x60] sm:$0xff] }
  0x6a   : > { %3746 = vmatmul.mubr.msk.bf16.gmra.mxu0 %vm1048_vm0, %v4003_v20  ;;  %3762 = vmatmul.mubr.msk.bf16.gmra.mxu1 %vm1048_vm0, %v4004_v21  ;;  %v869_v20 = vld [vmem:[%s4701_s25 + $0x68] sm:$0xff] }
  0x6b   : > { %3773 = vmatprep.mubr.msk.bf16.mxu1 %vm1048_vm0, %v4005_v22  ;;  %3813 = vmatprep.mubr.msk.bf16.mxu0 %vm1048_vm0, %v4006_v23  ;;  %v4050_v21 = vld [vmem:[%s4544_s14 + $0x1a8] sm:$0xff]   ;;  %v4051_v23 = vld [vmem:[%s4544_s14 + $0x1b0] sm:$0xff]  }
  0x72   : > { %3774 = vmatmul.mubr.msk.bf16.vlgmr.msra.gmra.mxu1 %vm1048_vm0, %v4007_v24  ;;  %3814 = vmatmul.mubr.msk.bf16.vlgmr.msra.gmra.mxu0 %vm1048_vm0, %v4008_v25  ;;  %v894_v24 = vpack.c.bf16 %v869_v20, %v868_v19  ;;  %v870_v25 = vld [vmem:[%s4701_s25 + $0x70] sm:$0xff] }
  0x73   : > { %3846 = vmatpush3.bf16.msra.mxu1 %v4522_v1  ;;  %3886 = vmatpush3.bf16.msra.mxu0 %v4009_v17  ;;  %v858_v1 = vld [vmem:[%s4701_s25 + $0x10] sm:$0xff] }
  0x74   : > { %3777 = vmatprep.mubr.msk.bf16.mxu1 %vm1048_vm0, %v4010_v26  ;;  %3817 = vmatprep.mubr.msk.bf16.mxu0 %vm1048_vm0, %v4011_v27  ;;  %v866_v17 = vld [vmem:[%s4701_s25 + $0x50] sm:$0xff]  ;;  %v871_v26 = vld [vmem:[%s4701_s25 + $0x78] sm:$0xff]  ;;  %v872_v27 = vld [vmem:[%s4701_s25 + $0x80] sm:$0xff] }
  0x75   : > { %3887 = vmatprep.subr.bf16.mxu0 %v4014_v28  ;;  %3847 = vmatprep.subr.bf16.mxu1 %v4530_v2  ;;  %v893_v22 = vpack.c.bf16 %v867_v18, %v866_v17 }
  0x77   : > { %3888 = vmatpush3.bf16.msra.mxu0 %v4014_v28  ;;  %3848 = vmatpush3.bf16.msra.mxu1 %v4530_v2  ;;  %v859_v2 = vld [vmem:[%s4701_s25 + $0x18] sm:$0xff]  ;;  %v873_v28 = vld [vmem:[%s4701_s25 + $0x88] sm:$0xff] }
  0x78   : > { %3889 = vmatprep.subr.bf16.mxu0 %v4019_v30  ;;  %3849 = vmatprep.subr.bf16.mxu1 %v4540_v3 }
  0x7a   : > { %3778 = vmatmul.mubr.msk.bf16.gmra.mxu1 %vm1048_vm0, %v4012_v29  ;;  %3818 = vmatmul.mubr.msk.bf16.gmra.mxu0 %vm1048_vm0, %v4013_v31  ;;  %v4052_v29 = vld [vmem:[%s4544_s14 + $0x1b8] sm:$0xff]   ;;  %v4053_v31 = vld [vmem:[%s4544_s14 + $0x1c0] sm:$0xff]  }
  0x7b   : > { %3781 = vmatprep.mubr.msk.bf16.mxu1 %vm1048_vm0, %v4015_v32  ;;  %3821 = vmatprep.mubr.msk.bf16.mxu0 %vm1048_vm0, %v4016_v33  ;;  %v896_v32 = vpack.c.bf16 %v873_v28, %v872_v27  ;;  %v874_v33 = vld [vmem:[%s4701_s25 + $0x90] sm:$0xff] }
  0x7c   : > { %3890 = vmatpush3.bf16.msra.mxu0 %v4019_v30  ;;  %3850 = vmatpush3.bf16.msra.mxu1 %v4540_v3  ;;  %v860_v3 = vld [vmem:[%s4701_s25 + $0x20] sm:$0xff]  ;;  %v895_v30 = vpack.c.bf16 %v871_v26, %v870_v25 }
  0x7d   : > { %3891 = vmatprep.subr.bf16.mxu0 %v4024_v34  ;;  %3851 = vmatprep.subr.bf16.mxu1 %v4556_v6  ;;  %v890_v8 = vpack.c.bf16 %v861_v4, %v860_v3 }
  0x80   : > { %3892 = vmatpush3.bf16.msra.mxu0 %v4024_v34  ;;  %3852 = vmatpush3.bf16.msra.mxu1 %v4556_v6  ;;  %v889_v6 = vpack.c.bf16 %v859_v2, %v858_v1  ;;  %v875_v34 = vld [vmem:[%s4701_s25 + $0x98] sm:$0xff] }
  0x81   : > { %3893 = vmatprep.subr.bf16.mxu0 %v4029_v36 }
  0x82   : > { %3782 = vmatmul.mubr.msk.bf16.gmra.mxu1 %vm1048_vm0, %v4017_v35  ;;  %3822 = vmatmul.mubr.msk.bf16.gmra.mxu0 %vm1048_vm0, %v4018_v37  ;;  %v876_v35 = vld [vmem:[%s4701_s25 + $0xa0] sm:$0xff]  ;;  %v4054_v37 = vld [vmem:[%s4544_s14 + $0x1c8] sm:$0xff]  }
  0x83   : > { %3785 = vmatprep.mubr.msk.bf16.mxu1 %vm1048_vm0, %v4020_v38  ;;  %3825 = vmatprep.mubr.msk.bf16.mxu0 %vm1048_vm0, %v4021_v39  ;;  %v897_v38 = vpack.c.bf16 %v875_v34, %v874_v33  ;;  %v4055_v39 = vld [vmem:[%s4544_s14 + $0x1d0] sm:$0xff]  }
  0x84   : > { %3894 = vmatpush3.bf16.msra.mxu0 %v4029_v36  ;;  %v877_v36 = vld [vmem:[%s4701_s25 + $0xa8] sm:$0xff] }
  0x85   : > { %3895 = vmatprep.subr.bf16.mxu0 %v4034_v40 }
  0x88   : > { %3896 = vmatpush3.bf16.msra.mxu0 %v4034_v40  ;;  %v898_v40 = vpack.c.bf16 %v877_v36, %v876_v35 }
  0x89   : > { %3897 = vmatprep.subr.bf16.mxu0 %v4039_v43 }
  0x8a   : > { %3786 = vmatmul.mubr.msk.bf16.gmra.mxu1 %vm1048_vm0, %v4022_v41  ;;  %3826 = vmatmul.mubr.msk.bf16.gmra.mxu0 %vm1048_vm0, %v4023_v42  ;;  %v878_v41 = vld [vmem:[%s4701_s25 + $0xb0] sm:$0xff]  ;;  %v879_v42 = vld [vmem:[%s4701_s25 + $0xb8] sm:$0xff] }
  0x8b   : > { %3789 = vmatprep.mubr.msk.bf16.mxu1 %vm1048_vm0, %v4025_v44  ;;  %3829 = vmatprep.mubr.msk.bf16.mxu0 %vm1048_vm0, %v4026_v45  ;;  %v881_v44 = vld [vmem:[%s4701_s25 + $0xc8] sm:$0xff]  ;;  %v4056_v45 = vld [vmem:[%s4544_s14 + $0x1d8] sm:$0xff]  }
  0x8c   : > { %3898 = vmatpush3.bf16.msra.mxu0 %v4039_v43  ;;  %v880_v43 = vld [vmem:[%s4701_s25 + $0xc0] sm:$0xff] }
  0x8d   : > { %3899 = vmatprep.subr.bf16.mxu0 %v4044_v46 }
  0x90   : > { %3900 = vmatpush3.bf16.msra.mxu0 %v4044_v46  ;;  %v899_v46 = vpack.c.bf16 %v879_v42, %v878_v41 }
  0x92   : > { %3790 = vmatmul.mubr.msk.bf16.gmra.mxu1 %vm1048_vm0, %v4027_v47  ;;  %3830 = vmatmul.mubr.msk.bf16.gmra.mxu0 %vm1048_vm0, %v4028_v48  ;;  %v4057_v47 = vld [vmem:[%s4544_s14 + $0x1e0] sm:$0xff]   ;;  %v900_v48 = vpack.c.bf16 %v881_v44, %v880_v43 }
  0x93   : > { %3793 = vmatprep.mubr.msk.bf16.mxu1 %vm1048_vm0, %v4030_v49  ;;  %3833 = vmatprep.mubr.msk.bf16.mxu0 %vm1048_vm0, %v4031_v50  ;;  %v882_v49 = vld [vmem:[%s4701_s25 + $0xd0] sm:$0xff]  ;;  %v883_v50 = vld [vmem:[%s4701_s25 + $0xd8] sm:$0xff] }
  0x9a   : > { %3794 = vmatmul.mubr.msk.bf16.gmra.mxu1 %vm1048_vm0, %v4032_v51  ;;  %3834 = vmatmul.mubr.msk.bf16.gmra.mxu0 %vm1048_vm0, %v4033_v52  ;;  %v884_v51 = vld [vmem:[%s4701_s25 + $0xe0] sm:$0xff]  ;;  %v885_v52 = vld [vmem:[%s4701_s25 + $0xe8] sm:$0xff] }
  0x9b   : > { %3797 = vmatprep.mubr.msk.bf16.mxu1 %vm1048_vm0, %v4035_v53  ;;  %3837 = vmatprep.mubr.msk.bf16.mxu0 %vm1048_vm0, %v4036_v54  ;;  %v4058_v53 = vld [vmem:[%s4544_s14 + $0x1e8] sm:$0xff]   ;;  %v901_v54 = vpack.c.bf16 %v883_v50, %v882_v49 }
  0xa2   : > { %3798 = vmatmul.mubr.msk.bf16.gmra.mxu1 %vm1048_vm0, %v4037_v55  ;;  %3838 = vmatmul.mubr.msk.bf16.gmra.mxu0 %vm1048_vm0, %v4038_v56  ;;  %v4059_v55 = vld [vmem:[%s4544_s14 + $0x1f0] sm:$0xff]   ;;  %v902_v56 = vpack.c.bf16 %v885_v52, %v884_v51  ;;  %s4225_s14 = sshll.u32 %s4284_s6, 4  ;;  %s4226_s14 = int_to_ptr.vmem [resolvable:$false] %s4225_s14 }
  0xa3   : > { %3801 = vmatprep.mubr.msk.bf16.mxu1 %vm1048_vm0, %v4040_v57  ;;  %3841 = vmatprep.mubr.msk.bf16.mxu0 %vm1048_vm0, %v4041_v58  ;;  %v886_v57 = vld [vmem:[%s4701_s25 + $0xf0] sm:$0xff]  ;;  %v887_v58 = vld [vmem:[%s4701_s25 + $0xf8] sm:$0xff]  ;;  %s4227_s30 = scalar_lea.vmem %s4226_s14, 8192  ;;  %p4228_p3 = scmp.lt.s32.totalorder %s5245_s18, %s4226_s14 }
  0xa4   : > { %v903_v60 = vpack.c.bf16 %v887_v58, %v886_v57  ;;  %p4229_p4 = scmp.lt.s32.totalorder %s4227_s30, %s4221_s24 }
  0xa6   : > { %p4230_p5 = por %p4229_p4, %p4228_p3 }
  0xa8   : > { %p4231_p7 = pnand %p4230_p5, %p4224_p2 }
  0xaa   : > { %3802 = vmatmul.mubr.msk.bf16.gmra.mxu1 %vm1048_vm0, %v4042_v61  ;;  %3842 = vmatmul.mubr.msk.bf16.gmra.mxu0 %vm1048_vm0, %v4043_v62 }
  0xab   : > { %3853 = vmatprep.mubr.msk.bf16.mxu1 %vm1048_vm0, %v4045_v63  ;;  %3901 = vmatprep.mubr.bf16.mxu0 %v888_v0 }
  0xb2   : > { %3854 = vmatmul.mubr.msk.bf16.vlgmr.msra.gmra.mxu1 %vm1048_vm0, %v4046_v5  ;;  %3902 = vmatmul.mubr.bf16.vlgmr.msra.gmra.mxu0 %v889_v6 }
  0xb3   : > { %3857 = vmatprep.mubr.msk.bf16.mxu1 %vm1048_vm0, %v4047_v7  ;;  %3905 = vmatprep.mubr.bf16.mxu0 %v890_v8 }
  0xba   : > { %3858 = vmatmul.mubr.msk.bf16.gmra.mxu1 %vm1048_vm0, %v4048_v13  ;;  %3906 = vmatmul.mubr.bf16.gmra.mxu0 %v891_v14 }
  0xbb   : > { %3861 = vmatprep.mubr.msk.bf16.mxu1 %vm1048_vm0, %v4049_v15  ;;  %3909 = vmatprep.mubr.bf16.mxu0 %v892_v16 }
  0xc2   : > { %3862 = vmatmul.mubr.msk.bf16.gmra.mxu1 %vm1048_vm0, %v4050_v21  ;;  %3910 = vmatmul.mubr.bf16.gmra.mxu0 %v893_v22 }
  0xc3   : > { %3865 = vmatprep.mubr.msk.bf16.mxu1 %vm1048_vm0, %v4051_v23  ;;  %3913 = vmatprep.mubr.bf16.mxu0 %v894_v24 }
  0xca   : > { %3866 = vmatmul.mubr.msk.bf16.gmra.mxu1 %vm1048_vm0, %v4052_v29  ;;  %3914 = vmatmul.mubr.bf16.gmra.mxu0 %v895_v30 }
  0xcb   : > { %3869 = vmatprep.mubr.msk.bf16.mxu1 %vm1048_vm0, %v4053_v31  ;;  %3917 = vmatprep.mubr.bf16.mxu0 %v896_v32 }
  0xd2   : > { %3870 = vmatmul.mubr.msk.bf16.gmra.mxu1 %vm1048_vm0, %v4054_v37  ;;  %3918 = vmatmul.mubr.bf16.gmra.mxu0 %v897_v38 }
  0xd3   : > { %3873 = vmatprep.mubr.msk.bf16.mxu1 %vm1048_vm0, %v4055_v39  ;;  %3921 = vmatprep.mubr.bf16.mxu0 %v898_v40 }
  0xda   : > { %3874 = vmatmul.mubr.msk.bf16.gmra.mxu1 %vm1048_vm0, %v4056_v45  ;;  %3922 = vmatmul.mubr.bf16.gmra.mxu0 %v899_v46 }
  0xdb   : > { %3877 = vmatprep.mubr.msk.bf16.mxu1 %vm1048_vm0, %v4057_v47  ;;  %3925 = vmatprep.mubr.bf16.mxu0 %v900_v48 }
  0xe2   : > { %3878 = vmatmul.mubr.msk.bf16.gmra.mxu1 %vm1048_vm0, %v4058_v53  ;;  %3926 = vmatmul.mubr.bf16.gmra.mxu0 %v901_v54 }
  0xe3   : > { %3881 = vmatprep.mubr.msk.bf16.mxu1 %vm1048_vm0, %v4059_v55  ;;  %3929 = vmatprep.mubr.bf16.mxu0 %v902_v56 }
  0xea   : > { %3882 = vmatmul.mubr.msk.bf16.gmra.mxu1 %vm1048_vm0, %v4060_v59  ;;  %3930 = vmatmul.mubr.bf16.gmra.mxu0 %v903_v60 }
 0x112   : > { %v4775_v61 = vpop.f32.mrf.mxu0  ;;  %v4777_v62 = vpop.f32.mrf.mxu1 }
 0x114   : > { %v4779_v63 = vpop.f32.mrf.mxu0  ;;  %v4781_v0 = vpop.f32.mrf.mxu1 }
 0x116   : > { %v4783_v1 = vpop.f32.mrf.mxu0  ;;  %v4785_v2 = vpop.f32.mrf.mxu1 }
 0x118   : > { %v4787_v3 = vpop.f32.mrf.mxu0  ;;  %v4789_v4 = vpop.f32.mrf.mxu1 }
 0x119   : > { %5300 = vst [vmem:[#allocation7_spill] sm:$0xff] %v4789_v4 }
 0x11a   : > { %v4791_v5 = vpop.f32.mrf.mxu0  ;;  %v4793_v6 = vpop.f32.mrf.mxu1 }
 0x11b   : > { %5301 = vst [vmem:[#allocation8_spill] sm:$0xff] %v4793_v6 }
 0x11c   : > { %v1147_v7 = vpop.f32.mrf.mxu0  ;;  %v4795_v8 = vpop.f32.mrf.mxu1 }
 0x11e   : > { %v4797_v9 = vpop.f32.mrf.mxu0  ;;  %v4799_v10 = vpop.f32.mrf.mxu1 }
 0x11f   : > { %5302 = vst [vmem:[#allocation9_spill] sm:$0xff] %v4799_v10 }
 0x120   : > { %v4801_v11 = vpop.f32.mrf.mxu0  ;;  %v4803_v12 = vpop.f32.mrf.mxu1 }
 0x121   : > { %5303 = vst [vmem:[#allocation10_spill] sm:$0xff] %v4803_v12 }
 0x122   : > { %v4805_v13 = vpop.f32.mrf.mxu0  ;;  %v4807_v14 = vpop.f32.mrf.mxu1 }
 0x123   : > { %5304 = vst [vmem:[#allocation11_spill] sm:$0xff] %v4807_v14 }
 0x124   : > { %v1163_v15 = vpop.f32.mrf.mxu0  ;;  %v4809_v16 = vpop.f32.mrf.mxu1 }
 0x126   : > { %v4811_v17 = vpop.f32.mrf.mxu0  ;;  %v4813_v18 = vpop.f32.mrf.mxu1 }
 0x127   : > { %5305 = vst [vmem:[#allocation12_spill] sm:$0xff] %v4813_v18 }
 0x128   : > { %v4815_v19 = vpop.f32.mrf.mxu0  ;;  %v4817_v20 = vpop.f32.mrf.mxu1 }
 0x129   : > { %5306 = vst [vmem:[#allocation13_spill] sm:$0xff] %v4817_v20 }
 0x12a   : > { %v4819_v21 = vpop.f32.mrf.mxu0  ;;  %v4821_v22 = vpop.f32.mrf.mxu1 }
 0x12c   : > { %v1179_v23 = vpop.f32.mrf.mxu0  ;;  %v4823_v24 = vpop.f32.mrf.mxu1 }
 0x12d   : > { %5307 = vst [vmem:[#allocation14_spill] sm:$0xff] %v4823_v24 }
 0x12e   : > { %v4825_v25 = vpop.f32.mrf.mxu0  ;;  %v4827_v26 = vpop.f32.mrf.mxu1 }
 0x12f   : > { %5308 = vst [vmem:[#allocation15_spill] sm:$0xff] %v4827_v26 }
 0x130   : > { %v4829_v27 = vpop.f32.mrf.mxu0  ;;  %v4831_v28 = vpop.f32.mrf.mxu1 }
 0x131   : > { %5309 = vst [vmem:[#allocation16_spill] sm:$0xff] %v4831_v28 }
 0x132   : > { %v4833_v29 = vpop.f32.mrf.mxu1  ;;  %v4835_v30 = vpop.f32.mrf.mxu0 }
 0x134   : > { %v4837_v31 = vpop.f32.mrf.mxu1  ;;  %v4839_v32 = vpop.f32.mrf.mxu0 }
 0x136   : > { %v4841_v33 = vpop.f32.mrf.mxu1  ;;  %v4843_v34 = vpop.f32.mrf.mxu0 }
 0x138   : > { %v4845_v35 = vpop.f32.mrf.mxu1  ;;  %v4847_v36 = vpop.f32.mrf.mxu0 }
 0x13a   : > { %v4849_v37 = vpop.f32.mrf.mxu1  ;;  %v4851_v38 = vpop.f32.mrf.mxu0 }
 0x13c   : > { %v1469_v39 = vpop.f32.mrf.mxu1  ;;  %v1823_v40 = vpop.f32.mrf.mxu0 }
 0x13d   : > { %v1584_v41 = vmax.f32 %v1147_v7, %v1469_v39 }
 0x13e   : > { %v4853_v42 = vpop.f32.mrf.mxu1  ;;  %v4855_v43 = vpop.f32.mrf.mxu0 }
 0x13f   : > { %v4857_v44 = vmax.f32 %v1584_v41, %v1823_v40 }
 0x140   : > { %v4859_v45 = vpop.f32.mrf.mxu1  ;;  %v4861_v46 = vpop.f32.mrf.mxu0 }
 0x142   : > { %v4863_v47 = vpop.f32.mrf.mxu1  ;;  %v4865_v48 = vpop.f32.mrf.mxu0 }
 0x144   : > { %v1485_v49 = vpop.f32.mrf.mxu1  ;;  %v1839_v50 = vpop.f32.mrf.mxu0 }
 0x145   : > { %v1588_v51 = vmax.f32 %v1163_v15, %v1485_v49 }
 0x146   : > { %v4867_v52 = vpop.f32.mrf.mxu1  ;;  %v4869_v53 = vpop.f32.mrf.mxu0 }
 0x147   : > { %v4871_v54 = vmax.f32 %v1588_v51, %v1839_v50 }
 0x148   : > { %v4873_v55 = vpop.f32.mrf.mxu1  ;;  %v4875_v56 = vpop.f32.mrf.mxu0 }
 0x14a   : > { %v4877_v57 = vpop.f32.mrf.mxu1  ;;  %v4879_v58 = vpop.f32.mrf.mxu0 }
 0x14c   : > { %v1501_v59 = vpop.f32.mrf.mxu1  ;;  %v1855_v60 = vpop.f32.mrf.mxu0 }
 0x14d   : > { %v1592_v7 = vmax.f32 %v1179_v23, %v1501_v59 }
 0x14e   : > { %v4881_v39 = vpop.f32.mrf.mxu1  ;;  %v4883_v15 = vpop.f32.mrf.mxu0 }
 0x14f   : > { %v4885_v40 = vmax.f32 %v1592_v7, %v1855_v60 }
 0x150   : > { %v4887_v41 = vpop.f32.mrf.mxu1  ;;  %v4889_v49 = vpop.f32.mrf.mxu0 }
 0x152   : > { %v4891_v50 = vpop.f32.mrf.mxu1  ;;  %v4893_v51 = vpop.f32.mrf.mxu0 }
 0x154   : > { %v1517_v28 = vpop.f32.mrf.mxu1  ;;  %v1871_v26 = vpop.f32.mrf.mxu0 }
 0x155   : > { %v1596_v24 = vmax.f32 %v4781_v0, %v1517_v28 }
 0x156   : > { %v4896_v20 = vpop.f32.mrf.mxu1  ;;  %v4898_v23 = vpop.f32.mrf.mxu0 }
 0x157   : > { %5310 = vst [vmem:[#allocation17_spill] sm:$0xff] %v4898_v23  ;;  %v4900_v59 = vmax.f32 %v1596_v24, %v1871_v26 }
 0x158   : > { %v4902_v60 = vpop.f32.mrf.mxu1  ;;  %v4904_v7 = vpop.f32.mrf.mxu0 }
 0x159   : > { %5311 = vst [vmem:[#allocation18_spill] sm:$0xff] %v4900_v59  ;;  %5312 = vst [vmem:[#allocation19_spill] sm:$0xff] %v4902_v60 }
 0x15a   : > { %5313 = vst [vmem:[#allocation20_spill] sm:$0xff] %v4904_v7  ;;  %v4906_v18 = vpop.f32.mrf.mxu1  ;;  %v4908_v14 = vpop.f32.mrf.mxu0 }
 0x15b   : > { %5314 = vst [vmem:[#allocation21_spill] sm:$0xff] %v4906_v18  ;;  %5315 = vst [vmem:[#allocation22_spill] sm:$0xff] %v4908_v14 }
 0x15c   : > { %v1533_v12 = vpop.f32.mrf.mxu1  ;;  %v1887_v10 = vpop.f32.mrf.mxu0 }
 0x15d   : > { %v1600_v6 = vmax.f32 %v4795_v8, %v1533_v12 }
 0x15e   : > { %v4911_v4 = vpop.f32.mrf.mxu1  ;;  %v4913_v0 = vpop.f32.mrf.mxu0 }
 0x15f   : > { %5316 = vst [vmem:[#allocation23_spill] sm:$0xff] %v4913_v0  ;;  %v4915_v28 = vmax.f32 %v1600_v6, %v1887_v10 }
 0x160   : > { %v4917_v24 = vpop.f32.mrf.mxu1  ;;  %v4919_v26 = vpop.f32.mrf.mxu0 }
 0x161   : > { %5317 = vst [vmem:[#allocation24_spill] sm:$0xff] %v4915_v28  ;;  %5318 = vst [vmem:[#allocation25_spill] sm:$0xff] %v4919_v26 }
 0x162   : > { %v4921_v59 = vpop.f32.mrf.mxu1  ;;  %v4923_v7 = vpop.f32.mrf.mxu0 }
 0x163   : > { %5319 = vst [vmem:[#allocation26_spill] sm:$0xff] %v4921_v59  ;;  %5320 = vst [vmem:[#allocation27_spill] sm:$0xff] %v4923_v7 }
 0x164   : > { %v1549_v23 = vpop.f32.mrf.mxu1  ;;  %v1903_v14 = vpop.f32.mrf.mxu0 }
 0x165   : > { %v1604_v18 = vmax.f32 %v4809_v16, %v1549_v23  ;;  %v1582_v16 = vmax.f32 %v4775_v61, %v4833_v29 }
 0x166   : > { %v4926_v60 = vpop.f32.mrf.mxu1  ;;  %v4928_v8 = vpop.f32.mrf.mxu0 }
 0x167   : > { %5321 = vst [vmem:[#allocation28_spill] sm:$0xff] %v4928_v8  ;;  %v4930_v12 = vmax.f32 %v1604_v18, %v1903_v14  ;;  %v1580_v18 = vmax.f32 %v4779_v63, %v4837_v31  ;;  %v1586_v63 = vmax.f32 %v4791_v5, %v4849_v37  ;;  %v4966_v31 = vld [vmem:[%s5294_s4] ss:$0 sm:$0xff]  ;;  %v1587_v37 = vmax.f32 %v4797_v9, %v4853_v42 }
 0x168   : > { %v4932_v6 = vpop.f32.mrf.mxu1  ;;  %v4934_v10 = vpop.f32.mrf.mxu0 }
 0x169   : > { %5322 = vst [vmem:[#allocation29_spill] sm:$0xff] %v4930_v12  ;;  %5323 = vst [vmem:[#allocation30_spill] sm:$0xff] %v4934_v10  ;;  %v1934_v29 = vmax.f32 %v1580_v18, %v4839_v32  ;;  %v1940_v5 = vmax.f32 %v1586_v63, %v4851_v38  ;;  %v1590_v63 = vmax.f32 %v4805_v13, %v4863_v47 }
 0x16a   : > { %v3803_v28 = vpop.f32.mrf.mxu1  ;;  %v3843_v26 = vpop.f32.mrf.mxu0 }
 0x16b   : > { %v1610_v0 = vmax.f32 %v4821_v22, %v3803_v28  ;;  %v1936_v22 = vmax.f32 %v1582_v16, %v4835_v30  ;;  %v1583_v28 = vmax.f32 %v4783_v1, %v4841_v33 }
 0x16c   : > { %v4937_v59 = vpop.f32.mrf.mxu1  ;;  %v4939_v7 = vpop.f32.mrf.mxu0 }
 0x16d   : > { %5324 = vst [vmem:[#allocation31_spill] sm:$0xff] %v4939_v7  ;;  %v4943_v23 = vmax.f32 %v1610_v0, %v3843_v26  ;;  %v1581_v0 = vmax.f32 %v4787_v3, %v4845_v35  ;;  %v1937_v1 = vmax.f32 %v1583_v28, %v4843_v34 }
 0x16e   : > { %v4945_v8 = vpop.f32.mrf.mxu1  ;;  %v4947_v14 = vpop.f32.mrf.mxu0 }
 0x16f   : > { %5325 = vst [vmem:[#allocation32_spill] sm:$0xff] %v4943_v23  ;;  %5326 = vst [vmem:[#allocation33_spill] sm:$0xff] %v4947_v14  ;;  %v1935_v18 = vmax.f32 %v1581_v0, %v4847_v36  ;;  %v4978_v36 = vld [vmem:[%s5295_s5] ss:$0 sm:$0xff] }
 0x170   : > { %v4951_v10 = vpop.f32.mrf.mxu1  ;;  %v4953_v12 = vpop.f32.mrf.mxu0 }
 0x171   : > { %5327 = vst [vmem:[#allocation34_spill] sm:$0xff] %v4951_v10  ;;  %5328 = vst [vmem:[#allocation35_spill] sm:$0xff] %v4953_v12 }
 0x172   : > { %v3855_v7 = vpop.f32.mrf.mxu1  ;;  %v3903_v61 = vpop.f32.mrf.mxu0 }
 0x173   : > { %v2290_v26 = vmax.f32 %v1936_v22, %v3855_v7 }
 0x174   : > { %v2161_v30 = vpop.f32.mrf.mxu1  ;;  %v2418_v16 = vpop.f32.mrf.mxu0 }
 0x175   : > { %v2547_v33 = vadd.f32 %v3903_v61, %v2290_v26  ;;  %v2288_v12 = vmax.f32 %v1934_v29, %v2161_v30  ;;  %v1941_v26 = vmax.f32 %v1587_v37, %v4855_v43  ;;  %v1591_v37 = vmax.f32 %v4811_v17, %v4867_v52 }
 0x176   : > { %v3856_v14 = vpop.f32.mrf.mxu1  ;;  %v3904_v32 = vpop.f32.mrf.mxu0 }
 0x177   : > { %v2586_v3 = vadd.f32 %v4966_v31, %v2547_v33  ;;  %v2545_v35 = vadd.f32 %v2418_v16, %v2288_v12  ;;  %v2291_v7 = vmax.f32 %v1937_v1, %v3856_v14  ;;  %v1585_v12 = vmax.f32 %v4801_v11, %v4859_v45 }
 0x178   : > { %v2164_v22 = vpop.f32.mrf.mxu1  ;;  %v2421_v23 = vpop.f32.mrf.mxu0 }
 0x179   : > { %v2618_v10 = vmax.f32 %v2586_v3, 0.0  ;;  %v2584_v34 = vadd.f32 %v4966_v31, %v2545_v35  ;;  %v2548_v28 = vadd.f32 %v3904_v32, %v2291_v7  ;;  %v2289_v61 = vmax.f32 %v1935_v18, %v2164_v22 }
 0x17a   : > { %v3859_v14 = vpop.f32.mrf.mxu1  ;;  %v3907_v38 = vpop.f32.mrf.mxu0  ;;  %v1939_v18 = vmax.f32 %v1585_v12, %v4861_v46 }
 0x17b   : > { %v2616_v29 = vmax.f32 %v2584_v34, 0.0  ;;  %v2587_v9 = vadd.f32 %v4966_v31, %v2548_v28  ;;  %v2546_v42 = vadd.f32 %v2421_v23, %v2289_v61  ;;  %v2294_v0 = vmax.f32 %v1940_v5, %v3859_v14 }
 0x17c   : > { %v2177_v30 = vpop.f32.mrf.mxu1  ;;  %v2434_v16 = vpop.f32.mrf.mxu0  ;;  %v2657_v1 = vmul.f32 %v4978_v36, %v2618_v10  ;;  %v1944_v10 = vmax.f32 %v1590_v63, %v4865_v48  ;;  %v1594_v48 = vmax.f32 %v4819_v21, %v4877_v57  ;;  %v1945_v63 = vmax.f32 %v1591_v37, %v4869_v53 }
 0x17d   : > { %v2619_v33 = vmax.f32 %v2587_v9, 0.0  ;;  %v2585_v32 = vadd.f32 %v4966_v31, %v2546_v42  ;;  %v2551_v11 = vadd.f32 %v3907_v38, %v2294_v0  ;;  %v2292_v45 = vmax.f32 %v4857_v44, %v2177_v30 }
 0x17e   : > { %v3860_v3 = vpop.f32.mrf.mxu1  ;;  %v2693_v23 = vsel %vm1048_vm0, %v2657_v1, 0.0  ;;  %v3908_v35 = vpop.f32.mrf.mxu0  ;;  %v2655_v43 = vmul.f32 %v4978_v36, %v2616_v29  ;;  %v1589_v38 = vmax.f32 %v4815_v19, %v4873_v55 }
 0x17f   : > { %v2617_v7 = vmax.f32 %v2585_v32, 0.0  ;;  %v2590_v13 = vadd.f32 %v4966_v31, %v2551_v11  ;;  %v2549_v47 = vadd.f32 %v2434_v16, %v2292_v45  ;;  %v2295_v5 = vmax.f32 %v1941_v26, %v3860_v3  ;;  %2694 = vadd.xlane.f32.xlu1 %v2693_v23 }
 0x180   : > { %v2180_v44 = vpop.f32.mrf.mxu1  ;;  %v2687_v46 = vsel %vm1048_vm0, %v2655_v43, 0.0  ;;  %v2437_v22 = vpop.f32.mrf.mxu0  ;;  %v2658_v34 = vmul.f32 %v4978_v36, %v2619_v33  ;;  %v1943_v11 = vmax.f32 %v1589_v38, %v4875_v56  ;;  %v1948_v45 = vmax.f32 %v1594_v48, %v4879_v58 }
 0x181   : > { %v2622_v28 = vmax.f32 %v2590_v13, 0.0  ;;  %v2588_v61 = vadd.f32 %v4966_v31, %v2549_v47  ;;  %v2552_v12 = vadd.f32 %v3908_v35, %v2295_v5  ;;  %v2293_v14 = vmax.f32 %v1939_v18, %v2180_v44  ;;  %2688 = vadd.xlane.f32.xlu0 %v2687_v46 }
 0x182   : > { %v3863_v29 = vpop.f32.mrf.mxu1  ;;  %v2696_v17 = vsel %vm1048_vm0, %v2658_v34, 0.0  ;;  %v3911_v52 = vpop.f32.mrf.mxu0  ;;  %v2656_v9 = vmul.f32 %v4978_v36, %v2617_v7  ;;  %v1595_v7 = vmax.f32 %v4825_v25, %v4881_v39  ;;  %v1593_v46 = vmax.f32 %v4829_v27, %v4887_v41 }
 0x183   : > { %v2591_v42 = vadd.f32 %v4966_v31, %v2552_v12  ;;  %v2550_v0 = vadd.f32 %v2437_v22, %v2293_v14  ;;  %v2298_v26 = vmax.f32 %v1944_v10, %v3863_v29  ;;  %2697 = vadd.xlane.f32.xlu1 %v2696_v17  ;;  %v2620_v30 = vmax.f32 %v2588_v61, 0.0 }
 0x184   : > { %v2193_v16 = vpop.f32.mrf.mxu1  ;;  %v2690_v19 = vsel %vm1048_vm0, %v2656_v9, 0.0  ;;  %v2450_v55 = vpop.f32.mrf.mxu0  ;;  %v2661_v21 = vmul.f32 %v4978_v36, %v2622_v28  ;;  %v1598_v25 = vmax.f32 %v4777_v62, %v4891_v50  ;;  %v1949_v38 = vmax.f32 %v1595_v7, %v4883_v15 }
 0x185   : > { %v2623_v57 = vmax.f32 %v2591_v42, 0.0  ;;  %v2589_v1 = vadd.f32 %v4966_v31, %v2550_v0  ;;  %v2555_v33 = vadd.f32 %v3911_v52, %v2298_v26  ;;  %v2296_v32 = vmax.f32 %v4871_v54, %v2193_v16  ;;  %2691 = vadd.xlane.f32.xlu0 %v2690_v19 }
 0x186   : > { %v3864_v18 = vpop.f32.mrf.mxu1  ;;  %v3912_v53 = vpop.f32.mrf.mxu0  ;;  %v2705_v47 = vsel %vm1048_vm0, %v2661_v21, 0.0  ;;  %v2659_v56 = vmul.f32 %v4978_v36, %v2620_v30  ;;  %v1947_v42 = vmax.f32 %v1593_v46, %v4889_v49  ;;  %v1952_v0 = vmax.f32 %v1598_v25, %v4893_v51 }
 0x187   : > { %v2621_v3 = vmax.f32 %v2589_v1, 0.0  ;;  %v2594_v23 = vadd.f32 %v4966_v31, %v2555_v33  ;;  %v2553_v35 = vadd.f32 %v2450_v55, %v2296_v32  ;;  %v2299_v43 = vmax.f32 %v1945_v63, %v3864_v18  ;;  %v5329_v18 = vld [vmem:[#allocation19_spill] sm:$0xff] }
 0x188   : > { %v2196_v13 = vpop.f32.mrf.mxu1  ;;  %v2453_v5 = vpop.f32.mrf.mxu0  ;;  %v2662_v54 = vmul.f32 %v4978_v36, %v2623_v57  ;;  %v2699_v27 = vsel %vm1048_vm0, %v2659_v56, 0.0  ;;  %v1599_v21 = vmax.f32 %v4785_v2, %v4896_v20  ;;  %v5333_v56 = vld [vmem:[#allocation17_spill] sm:$0xff] }
 0x189   : > { %v2626_v10 = vmax.f32 %v2594_v23, 0.0  ;;  %v2592_v58 = vadd.f32 %v4966_v31, %v2553_v35  ;;  %v2556_v37 = vadd.f32 %v3912_v53, %v2299_v43  ;;  %v2297_v44 = vmax.f32 %v1943_v11, %v2196_v13  ;;  %2706 = vadd.xlane.f32.xlu0 %v2705_v47  ;;  %v5330_v53 = vld [vmem:[#allocation7_spill] sm:$0xff]  ;;  %v5331_v23 = vld [vmem:[#allocation21_spill] sm:$0xff]  ;;  %v5332_v35 = vld [vmem:[#allocation8_spill] sm:$0xff] }
 0x18a   : > { %v3867_v39 = vpop.f32.mrf.mxu1  ;;  %v2708_v22 = vsel %vm1048_vm0, %v2662_v54, 0.0  ;;  %v3915_v34 = vpop.f32.mrf.mxu0  ;;  %v2660_v28 = vmul.f32 %v4978_v36, %v2621_v3  ;;  %v1597_v3 = vmax.f32 %v5330_v53, %v5329_v18  ;;  %v1602_v2 = vmax.f32 %v5332_v35, %v5331_v23 }
 0x18b   : > { %v2595_v61 = vadd.f32 %v4966_v31, %v2556_v37  ;;  %v2554_v12 = vadd.f32 %v2453_v5, %v2297_v44  ;;  %v2302_v14 = vmax.f32 %v1948_v45, %v3867_v39  ;;  %2709 = vadd.xlane.f32.xlu1 %v2708_v22  ;;  %v2624_v48 = vmax.f32 %v2592_v58, 0.0 }
 0x18c   : > { %v2209_v29 = vpop.f32.mrf.mxu1  ;;  %v2466_v41 = vpop.f32.mrf.mxu0  ;;  %v2665_v62 = vmul.f32 %v4978_v36, %v2626_v10  ;;  %v2702_v15 = vsel %vm1048_vm0, %v2660_v28, 0.0  ;;  %v1953_v10 = vmax.f32 %v1599_v21, %v5333_v56  ;;  %v5334_v28 = vld [vmem:[#allocation18_spill] sm:$0xff]  ;;  %v5343_v56 = vld [vmem:[#allocation25_spill] sm:$0xff] }
 0x18d   : > { %v2627_v50 = vmax.f32 %v2595_v61, 0.0  ;;  %v2593_v17 = vadd.f32 %v4966_v31, %v2554_v12  ;;  %v2559_v52 = vadd.f32 %v3915_v34, %v2302_v14  ;;  %v2300_v9 = vmax.f32 %v4885_v40, %v2209_v29  ;;  %2700 = vadd.xlane.f32.xlu0 %v2699_v27  ;;  %v5335_v12 = vld [vmem:[#allocation20_spill] sm:$0xff] }
 0x18e   : > { %v3868_v26 = vpop.f32.mrf.mxu1  ;;  %v3916_v63 = vpop.f32.mrf.mxu0  ;;  %v2717_v40 = vsel %vm1048_vm0, %v2665_v62, 0.0  ;;  %v2663_v51 = vmul.f32 %v4978_v36, %v2624_v48  ;;  %v1951_v14 = vmax.f32 %v1597_v3, %v5335_v12  ;;  %v5341_v3 = vld [vmem:[#allocation23_spill] sm:$0xff] }
 0x18f   : > { %v2625_v30 = vmax.f32 %v2593_v17, 0.0  ;;  %v2598_v16 = vadd.f32 %v4966_v31, %v2559_v52  ;;  %v2557_v19 = vadd.f32 %v2466_v41, %v2300_v9  ;;  %v2303_v55 = vmax.f32 %v1949_v38, %v3868_v26  ;;  %2703 = vadd.xlane.f32.xlu1 %v2702_v15  ;;  %v5336_v38 = vld [vmem:[#allocation22_spill] sm:$0xff]  ;;  %v5337_v9 = vld [vmem:[#allocation9_spill] sm:$0xff] }
 0x190   : > { %v2212_v57 = vpop.f32.mrf.mxu1  ;;  %v2469_v1 = vpop.f32.mrf.mxu0  ;;  %v2666_v49 = vmul.f32 %v4978_v36, %v2627_v50  ;;  %v2711_v44 = vsel %vm1048_vm0, %v2663_v51, 0.0  ;;  %v1956_v48 = vmax.f32 %v1602_v2, %v5336_v38 }
 0x191   : > { %v2630_v33 = vmax.f32 %v2598_v16, 0.0  ;;  %v2596_v32 = vadd.f32 %v4966_v31, %v2557_v19  ;;  %v2560_v11 = vadd.f32 %v3916_v63, %v2303_v55  ;;  %v2301_v45 = vmax.f32 %v1947_v42, %v2212_v57  ;;  %2718 = vadd.xlane.f32.xlu0 %v2717_v40  ;;  %v5338_v57 = vld [vmem:[#allocation10_spill] sm:$0xff] }
 0x192   : > { %v3871_v20 = vpop.f32.mrf.mxu1  ;;  %v2720_v43 = vsel %vm1048_vm0, %v2666_v49, 0.0  ;;  %v3919_v7 = vpop.f32.mrf.mxu0  ;;  %v2664_v13 = vmul.f32 %v4978_v36, %v2625_v30  ;;  %v1603_v42 = vmax.f32 %v5337_v9, %v4911_v4  ;;  %v1601_v40 = vmax.f32 %v5338_v57, %v4917_v24  ;;  %v5340_v49 = vld [vmem:[#allocation11_spill] sm:$0xff] }
 0x193   : > { %v2599_v47 = vadd.f32 %v4966_v31, %v2560_v11  ;;  %v2558_v5 = vadd.f32 %v2469_v1, %v2301_v45  ;;  %v2306_v54 = vmax.f32 %v1952_v0, %v3871_v20  ;;  %2721 = vadd.xlane.f32.xlu1 %v2720_v43  ;;  %v2628_v58 = vmax.f32 %v2596_v32, 0.0  ;;  %v5339_v1 = vld [vmem:[#allocation26_spill] sm:$0xff] }
 0x194   : > { %v2225_v37 = vpop.f32.mrf.mxu1  ;;  %v2482_v46 = vpop.f32.mrf.mxu0  ;;  %v2669_v25 = vmul.f32 %v4978_v36, %v2630_v33  ;;  %v2714_v27 = vsel %vm1048_vm0, %v2664_v13, 0.0  ;;  %v1606_v4 = vmax.f32 %v5340_v49, %v5339_v1  ;;  %v1957_v23 = vmax.f32 %v1603_v42, %v5341_v3  ;;  %v5347_v42 = vld [vmem:[#allocation14_spill] sm:$0xff] }
 0x195   : > { %v2631_v39 = vmax.f32 %v2599_v47, 0.0  ;;  %v2597_v22 = vadd.f32 %v4966_v31, %v2558_v5  ;;  %v2563_v34 = vadd.f32 %v3919_v7, %v2306_v54  ;;  %v2304_v61 = vmax.f32 %v5334_v28, %v2225_v37  ;;  %2712 = vadd.xlane.f32.xlu0 %v2711_v44  ;;  %v5342_v5 = vld [vmem:[#allocation24_spill] sm:$0xff] }
 0x196   : > { %v3872_v29 = vpop.f32.mrf.mxu1  ;;  %v3920_v41 = vpop.f32.mrf.mxu0  ;;  %v2729_v26 = vsel %vm1048_vm0, %v2669_v25, 0.0  ;;  %v2667_v30 = vmul.f32 %v4978_v36, %v2628_v58  ;;  %v5344_v58 = vld [vmem:[#allocation27_spill] sm:$0xff] }
 0x197   : > { %v2629_v62 = vmax.f32 %v2597_v22, 0.0  ;;  %v2602_v50 = vadd.f32 %v4966_v31, %v2563_v34  ;;  %v2561_v17 = vadd.f32 %v2482_v46, %v2304_v61  ;;  %v2307_v52 = vmax.f32 %v1953_v10, %v3872_v29  ;;  %2715 = vadd.xlane.f32.xlu1 %v2714_v27  ;;  %v5345_v61 = vld [vmem:[#allocation12_spill] sm:$0xff] }
 0x198   : > { %v2228_v0 = vpop.f32.mrf.mxu1  ;;  %v2485_v15 = vpop.f32.mrf.mxu0  ;;  %v2670_v63 = vmul.f32 %v4978_v36, %v2631_v39  ;;  %v2723_v24 = vsel %vm1048_vm0, %v2667_v30, 0.0  ;;  %v1955_v10 = vmax.f32 %v1601_v40, %v5343_v56  ;;  %v1960_v37 = vmax.f32 %v1606_v4, %v5344_v58 }
 0x199   : > { %v2634_v16 = vmax.f32 %v2602_v50, 0.0  ;;  %v2600_v19 = vadd.f32 %v4966_v31, %v2561_v17  ;;  %v2564_v55 = vadd.f32 %v3920_v41, %v2307_v52  ;;  %v2305_v21 = vmax.f32 %v1951_v14, %v2228_v0  ;;  %2730 = vadd.xlane.f32.xlu0 %v2729_v26  ;;  %v5346_v52 = vld [vmem:[#allocation13_spill] sm:$0xff] }
 0x19a   : > { %v3875_v51 = vpop.f32.mrf.mxu1  ;;  %v2732_v33 = vsel %vm1048_vm0, %v2670_v63, 0.0  ;;  %v3923_v32 = vpop.f32.mrf.mxu0  ;;  %v2668_v11 = vmul.f32 %v4978_v36, %v2629_v62  ;;  %v1607_v12 = vmax.f32 %v5345_v61, %v4926_v60  ;;  %v1605_v9 = vmax.f32 %v5346_v52, %v4932_v6 }
 0x19b   : > { %v2603_v45 = vadd.f32 %v4966_v31, %v2564_v55  ;;  %v2562_v18 = vadd.f32 %v2485_v15, %v2305_v21  ;;  %v2310_v53 = vmax.f32 %v1956_v48, %v3875_v51  ;;  %2733 = vadd.xlane.f32.xlu1 %v2732_v33  ;;  %v2632_v35 = vmax.f32 %v2600_v19, 0.0  ;;  %v5348_v55 = vld [vmem:[#allocation28_spill] sm:$0xff]  ;;  %v5349_v33 = vld [vmem:[#allocation29_spill] sm:$0xff] }
 0x19c   : > { %v2241_v2 = vpop.f32.mrf.mxu1  ;;  %v2498_v20 = vpop.f32.mrf.mxu0  ;;  %v2673_v43 = vmul.f32 %v4978_v36, %v2634_v16  ;;  %v2726_v46 = vsel %vm1048_vm0, %v2668_v11, 0.0  ;;  %v1608_v60 = vmax.f32 %v5347_v42, %v4937_v59  ;;  %v1961_v21 = vmax.f32 %v1607_v12, %v5348_v55  ;;  %v5350_v11 = vld [vmem:[#allocation30_spill] sm:$0xff] }
 0x19d   : > { %v2635_v7 = vmax.f32 %v2603_v45, 0.0  ;;  %v2601_v13 = vadd.f32 %v4966_v31, %v2562_v18  ;;  %v2567_v47 = vadd.f32 %v3923_v32, %v2310_v53  ;;  %v2308_v54 = vmax.f32 %v5342_v5, %v2241_v2  ;;  %2724 = vadd.xlane.f32.xlu0 %v2723_v24  ;;  %v5351_v18 = vld [vmem:[#allocation31_spill] sm:$0xff] }
 0x19e   : > { %v3876_v44 = vpop.f32.mrf.mxu1  ;;  %v3924_v25 = vpop.f32.mrf.mxu0  ;;  %v2741_v38 = vsel %vm1048_vm0, %v2673_v43, 0.0  ;;  %v2671_v27 = vmul.f32 %v4978_v36, %v2632_v35  ;;  %v1959_v45 = vmax.f32 %v1605_v9, %v5350_v11  ;;  %v1962_v53 = vmax.f32 %v1608_v60, %v5351_v18 }
 0x19f   : > { %v2633_v39 = vmax.f32 %v2601_v13, 0.0  ;;  %v2606_v22 = vadd.f32 %v4966_v31, %v2567_v47  ;;  %v2565_v34 = vadd.f32 %v2498_v20, %v2308_v54  ;;  %v2311_v28 = vmax.f32 %v1957_v23, %v3876_v44  ;;  %2727 = vadd.xlane.f32.xlu1 %v2726_v46 }
 0x1a0   : > { %v2244_v14 = vpop.f32.mrf.mxu1  ;;  %v2501_v48 = vpop.f32.mrf.mxu0  ;;  %v2674_v29 = vmul.f32 %v4978_v36, %v2635_v7  ;;  %v2735_v6 = vsel %vm1048_vm0, %v2671_v27, 0.0  ;;  %v5352_v7 = vld [vmem:[#allocation15_spill] sm:$0xff]  ;;  %v5356_v27 = vld [vmem:[#allocation33_spill] sm:$0xff] }
 0x1a1   : > { %v2638_v41 = vmax.f32 %v2606_v22, 0.0  ;;  %v2604_v62 = vadd.f32 %v4966_v31, %v2565_v34  ;;  %v2568_v50 = vadd.f32 %v3924_v25, %v2311_v28  ;;  %v2309_v17 = vmax.f32 %v1955_v10, %v2244_v14  ;;  %2742 = vadd.xlane.f32.xlu0 %v2741_v38  ;;  %v5353_v25 = vld [vmem:[#allocation34_spill] sm:$0xff]  ;;  %v5355_v38 = vld [vmem:[#allocation32_spill] sm:$0xff] }
 0x1a2   : > { %v3879_v0 = vpop.f32.mrf.mxu1  ;;  %v2744_v26 = vsel %vm1048_vm0, %v2674_v29, 0.0  ;;  %v3927_v15 = vpop.f32.mrf.mxu0  ;;  %v2672_v63 = vmul.f32 %v4978_v36, %v2633_v39  ;;  %v1611_v13 = vmax.f32 %v5352_v7, %v4945_v8  ;;  %v5354_v39 = vld [vmem:[#allocation16_spill] sm:$0xff]  ;;  %v4283_v29 = vmov 0  }
 0x1a3   : > { %v2607_v30 = vadd.f32 %v4966_v31, %v2568_v50  ;;  %v2566_v16 = vadd.f32 %v2501_v48, %v2309_v17  ;;  %v2314_v19 = vmax.f32 %v1960_v37, %v3879_v0  ;;  %2745 = vadd.xlane.f32.xlu1 %v2744_v26  ;;  %v2636_v57 = vmax.f32 %v2604_v62, 0.0  ;;  %3984 = vset.pattern.permute.xlu0 %v4283_v29 }
 0x1a4   : > { %v2257_v40 = vpop.f32.mrf.mxu1  ;;  %v2514_v1 = vpop.f32.mrf.mxu0  ;;  %v2677_v59 = vmul.f32 %v4978_v36, %v2638_v41  ;;  %v2738_v23 = vsel %vm1048_vm0, %v2672_v63, 0.0  ;;  %v1609_v22 = vmax.f32 %v5354_v39, %v5353_v25  ;;  %v1965_v41 = vmax.f32 %v1611_v13, %v5356_v27  ;;  %3983 = vset.pattern.permute.xlu1 %v4283_v29 }
 0x1a5   : > { %v2639_v49 = vmax.f32 %v2607_v30, 0.0  ;;  %v2605_v4 = vadd.f32 %v4966_v31, %v2566_v16  ;;  %v2571_v51 = vadd.f32 %v3927_v15, %v2314_v19  ;;  %v2312_v32 = vmax.f32 %v5349_v33, %v2257_v40  ;;  %2736 = vadd.xlane.f32.xlu0 %v2735_v6  ;;  %v5357_v16 = vld [vmem:[#allocation35_spill] sm:$0xff] }
 0x1a6   : > { %v3880_v3 = vpop.f32.mrf.mxu1  ;;  %v3928_v35 = vpop.f32.mrf.mxu0  ;;  %v2753_v5 = vsel %vm1048_vm0, %v2677_v59, 0.0  ;;  %v2675_v10 = vmul.f32 %v4978_v36, %v2636_v57  ;;  %v1963_v19 = vmax.f32 %v1609_v22, %v5357_v16 }
 0x1a7   : > { %v2637_v2 = vmax.f32 %v2605_v4, 0.0  ;;  %v2610_v24 = vadd.f32 %v4966_v31, %v2571_v51  ;;  %v2569_v20 = vadd.f32 %v2514_v1, %v2312_v32  ;;  %v2315_v43 = vmax.f32 %v1961_v21, %v3880_v3  ;;  %2739 = vadd.xlane.f32.xlu1 %v2738_v23 }
 0x1a8   : > { %v2260_v47 = vpop.f32.mrf.mxu1  ;;  %v2517_v54 = vpop.f32.mrf.mxu0  ;;  %v2678_v56 = vmul.f32 %v4978_v36, %v2639_v49  ;;  %v2747_v17 = vsel %vm1048_vm0, %v2675_v10, 0.0 }
 0x1a9   : > { %v2642_v58 = vmax.f32 %v2610_v24, 0.0  ;;  %v2608_v37 = vadd.f32 %v4966_v31, %v2569_v20  ;;  %v2572_v44 = vadd.f32 %v3928_v35, %v2315_v43  ;;  %v2313_v46 = vmax.f32 %v1959_v45, %v2260_v47  ;;  %2754 = vadd.xlane.f32.xlu0 %v2753_v5 }
 0x1aa   : > { %v3883_v34 = vpop.f32.mrf.mxu1  ;;  %v2756_v8 = vsel %vm1048_vm0, %v2678_v56, 0.0  ;;  %v3931_v28 = vpop.f32.mrf.mxu0  ;;  %v2676_v61 = vmul.f32 %v4978_v36, %v2637_v2 }
 0x1ab   : > { %v2611_v12 = vadd.f32 %v4966_v31, %v2572_v44  ;;  %v2570_v14 = vadd.f32 %v2517_v54, %v2313_v46  ;;  %v2318_v48 = vmax.f32 %v5355_v38, %v3883_v34  ;;  %2757 = vadd.xlane.f32.xlu1 %v2756_v8  ;;  %v2640_v62 = vmax.f32 %v2608_v37, 0.0 }
 0x1ac   : > { %v2273_v50 = vpop.f32.mrf.mxu1  ;;  %v2530_v52 = vpop.f32.mrf.mxu0  ;;  %v2681_v9 = vmul.f32 %v4978_v36, %v2642_v58  ;;  %v2750_v63 = vsel %vm1048_vm0, %v2676_v61, 0.0  ;;  %v5139_v58 = vld [vmem:[#allocation2] ss:$0 sm:$0xff] }
 0x1ad   : > { %v2643_v42 = vmax.f32 %v2611_v12, 0.0  ;;  %v2609_v60 = vadd.f32 %v4966_v31, %v2570_v14  ;;  %v2575_v0 = vadd.f32 %v3931_v28, %v2318_v48  ;;  %v2316_v26 = vmax.f32 %v1962_v53, %v2273_v50  ;;  %2748 = vadd.xlane.f32.xlu0 %v2747_v17 }
 0x1ae   : > { %v3884_v15 = vpop.f32.mrf.mxu1  ;;  %v3932_v30 = vpop.f32.mrf.mxu0  ;;  %v2765_v1 = vsel %vm1048_vm0, %v2681_v9, 0.0  ;;  %v2679_v49 = vmul.f32 %v4978_v36, %v2640_v62 }
 0x1af   : > { %v2641_v55 = vmax.f32 %v2609_v60, 0.0  ;;  %v2573_v21 = vadd.f32 %v2530_v52, %v2316_v26  ;;  %v2319_v57 = vmax.f32 %v1965_v41, %v3884_v15  ;;  %2751 = vadd.xlane.f32.xlu1 %v2750_v63  ;;  %v2614_v40 = vadd.f32 %v4966_v31, %v2575_v0 }
 0x1b0   : > { %v2276_v6 = vpop.f32.mrf.mxu1  ;;  %v2682_v59 = vmul.f32 %v4978_v36, %v2643_v42  ;;  %v2533_v32 = vpop.f32.mrf.mxu0  ;;  %v2759_v35 = vsel %vm1048_vm0, %v2679_v49, 0.0 }
 0x1b1   : > { %v2612_v4 = vadd.f32 %v4966_v31, %v2573_v21  ;;  %v2576_v51 = vadd.f32 %v3932_v30, %v2319_v57  ;;  %v2317_v33 = vmax.f32 %v1963_v19, %v2276_v6  ;;  %2766 = vadd.xlane.f32.xlu0 %v2765_v1  ;;  %v2680_v45 = vmul.f32 %v4978_v36, %v2641_v55 }
 0x1b2   : > { %v2768_v11 = vsel %vm1048_vm0, %v2682_v59, 0.0  ;;  %v2646_v23 = vmax.f32 %v2614_v40, 0.0 }
 0x1b3   : > { %v2644_v18 = vmax.f32 %v2612_v4, 0.0  ;;  %v2615_v53 = vadd.f32 %v4966_v31, %v2576_v51  ;;  %v2574_v3 = vadd.f32 %v2533_v32, %v2317_v33  ;;  %2769 = vadd.xlane.f32.xlu1 %v2768_v11  ;;  %v2762_v43 = vsel %vm1048_vm0, %v2680_v45, 0.0 }
 0x1b4   : > { %v2685_v5 = vmul.f32 %v4978_v36, %v2646_v23 }
 0x1b5   : > { %v2647_v2 = vmax.f32 %v2615_v53, 0.0  ;;  %v2613_v24 = vadd.f32 %v4966_v31, %v2574_v3  ;;  %2760 = vadd.xlane.f32.xlu0 %v2759_v35  ;;  %v2683_v20 = vmul.f32 %v4978_v36, %v2644_v18 }
 0x1b6   : > { %v2777_v31 = vsel %vm1048_vm0, %v2685_v5, 0.0 }
 0x1b7   : > { %v2645_v7 = vmax.f32 %v2613_v24, 0.0  ;;  %2763 = vadd.xlane.f32.xlu1 %v2762_v43  ;;  %v2771_v13 = vsel %vm1048_vm0, %v2683_v20, 0.0  ;;  %v2686_v47 = vmul.f32 %v4978_v36, %v2647_v2 }
 0x1b9   : > { %2772 = vadd.xlane.f32.xlu0 %v2771_v13  ;;  %v2780_v54 = vsel %vm1048_vm0, %v2686_v47, 0.0  ;;  %v2684_v56 = vmul.f32 %v4978_v36, %v2645_v7 }
 0x1bb   : > { %2781 = vadd.xlane.f32.xlu1 %v2780_v54  ;;  %v2774_v10 = vsel %vm1048_vm0, %v2684_v56, 0.0 }
 0x1bd   : > { %2778 = vadd.xlane.f32.xlu0 %v2777_v31 }
 0x1bf   : > { %2775 = vadd.xlane.f32.xlu1 %v2774_v10 }
 0x208   : > { %v2695_v37 = vpop.xlane.xlu1 %2694 }
 0x209   : > { %v2792_v44 = vadd.f32 %v5139_v58, %v2695_v37 }
 0x20a   : > { %v2689_v46 = vpop.xlane.xlu0 %2688 }
 0x20b   : > { %v3584_v25 = vmul.f32 -1.442695, %v2792_v44  ;;  %v2790_v39 = vadd.f32 %v5139_v58, %v2689_v46 }
 0x20c   : > { %v2698_v22 = vpop.xlane.xlu1 %2697 }
 0x20d   : > { %4061 = vpow2.f32 %v3584_v25  ;;  %v3582_v34 = vmul.f32 -1.442695, %v2790_v39  ;;  %v2793_v36 = vadd.f32 %v5139_v58, %v2698_v22 }
 0x20e   : > { %v2692_v8 = vpop.xlane.xlu0 %2691 }
 0x20f   : > { %4063 = vpow2.f32 %v3582_v34  ;;  %v3585_v28 = vmul.f32 -1.442695, %v2793_v36  ;;  %v2791_v61 = vadd.f32 %v5139_v58, %v2692_v8 }
 0x211   : > { %4065 = vpow2.f32 %v3585_v28  ;;  %v3583_v12 = vmul.f32 -1.442695, %v2791_v61 }
 0x212   : > { %v2707_v14 = vpop.xlane.xlu0 %2706 }
 0x213   : > { %4067 = vpow2.f32 %v3583_v12  ;;  %v2796_v38 = vadd.f32 %v5139_v58, %v2707_v14 }
 0x214   : > { %v2710_v48 = vpop.xlane.xlu1 %2709 }
 0x215   : > { %v3588_v29 = vmul.f32 -1.442695, %v2796_v38  ;;  %v2797_v27 = vadd.f32 %v5139_v58, %v2710_v48 }
 0x216   : > { %v2701_v41 = vpop.xlane.xlu0 %2700 }
 0x217   : > { %4069 = vpow2.f32 %v3588_v29  ;;  %v3589_v62 = vmul.f32 -1.442695, %v2797_v27  ;;  %v2794_v50 = vadd.f32 %v5139_v58, %v2701_v41 }
 0x218   : > { %v2704_v17 = vpop.xlane.xlu1 %2703 }
 0x219   : > { %v3586_v52 = vmul.f32 -1.442695, %v2794_v50  ;;  %v2795_v9 = vadd.f32 %v5139_v58, %v2704_v17  ;;  %4071 = vpow2.f32 %v3589_v62 }
 0x21a   : > { %v4062_v42 = vpop.eup %4061  ;;  %v2719_v60 = vpop.xlane.xlu0 %2718 }
 0x21b   : > { %v2920_v0 = vadd.f32 1.0, %v4062_v42  ;;  %4073 = vpow2.f32 %v3586_v52  ;;  %v3587_v26 = vmul.f32 -1.442695, %v2795_v9  ;;  %v2800_v15 = vadd.f32 %v5139_v58, %v2719_v60 }
 0x21c   : > { %v4064_v63 = vpop.eup %4063  ;;  %v2722_v30 = vpop.xlane.xlu1 %2721 }
 0x21d   : > { %4075 = vrcp.f32 %v2920_v0  ;;  %v2918_v16 = vadd.f32 1.0, %v4064_v63  ;;  %v2801_v19 = vadd.f32 %v5139_v58, %v2722_v30  ;;  %v3592_v21 = vmul.f32 -1.442695, %v2800_v15 }
 0x21e   : > { %v4066_v55 = vpop.eup %4065  ;;  %4077 = vpow2.f32 %v3587_v26  ;;  %v2713_v57 = vpop.xlane.xlu0 %2712 }
 0x21f   : > { %4079 = vrcp.f32 %v2918_v16  ;;  %v2921_v40 = vadd.f32 1.0, %v4066_v55  ;;  %v3593_v6 = vmul.f32 -1.442695, %v2801_v19  ;;  %v2798_v1 = vadd.f32 %v5139_v58, %v2713_v57 }
 0x220   : > { %v4068_v59 = vpop.eup %4067  ;;  %v2716_v49 = vpop.xlane.xlu1 %2715 }
 0x221   : > { %4081 = vrcp.f32 %v2921_v40  ;;  %v2919_v4 = vadd.f32 1.0, %v4068_v59  ;;  %v2799_v51 = vadd.f32 %v5139_v58, %v2716_v49  ;;  %v3590_v32 = vmul.f32 -1.442695, %v2798_v1 }
 0x222   : > { %4083 = vpow2.f32 %v3593_v6  ;;  %v2731_v33 = vpop.xlane.xlu0 %2730 }
 0x223   : > { %4085 = vpow2.f32 %v3592_v21  ;;  %v3591_v11 = vmul.f32 -1.442695, %v2799_v51  ;;  %v2804_v45 = vadd.f32 %v5139_v58, %v2731_v33 }
 0x224   : > { %v4070_v18 = vpop.eup %4069  ;;  %4087 = vrcp.f32 %v2919_v4  ;;  %v2734_v53 = vpop.xlane.xlu1 %2733 }
 0x225   : > { %v2924_v3 = vadd.f32 1.0, %v4070_v18  ;;  %4089 = vpow2.f32 %v3591_v11  ;;  %v2805_v23 = vadd.f32 %v5139_v58, %v2734_v53  ;;  %v3596_v24 = vmul.f32 -1.442695, %v2804_v45 }
 0x226   : > { %v2725_v35 = vpop.xlane.xlu0 %2724  ;;  %v4072_v2 = vpop.eup %4071  ;;  %4091 = vpow2.f32 %v3590_v32 }
 0x227   : > { %v3597_v20 = vmul.f32 -1.442695, %v2805_v23  ;;  %v2802_v43 = vadd.f32 %v5139_v58, %v2725_v35  ;;  %4093 = vrcp.f32 %v2924_v3  ;;  %v2925_v56 = vadd.f32 1.0, %v4072_v2 }
 0x228   : > { %v4074_v7 = vpop.eup %4073  ;;  %v2728_v13 = vpop.xlane.xlu1 %2727 }
 0x229   : > { %v2922_v47 = vadd.f32 1.0, %v4074_v7  ;;  %v2803_v5 = vadd.f32 %v5139_v58, %v2728_v13  ;;  %4095 = vpow2.f32 %v3597_v20  ;;  %v3594_v37 = vmul.f32 -1.442695, %v2802_v43 }
 0x22a   : > { %v4076_v54 = vpop.eup %4075  ;;  %v2743_v31 = vpop.xlane.xlu0 %2742  ;;  %4097 = vpow2.f32 %v3596_v24 }
 0x22b   : > { %v4078_v10 = vpop.eup %4077  ;;  %v3595_v44 = vmul.f32 -1.442695, %v2803_v5  ;;  %v2808_v46 = vadd.f32 %v5139_v58, %v2743_v31  ;;  %3026 = vperm.xlu1 %3983, %v4076_v54   ;;  %4099 = vrcp.f32 %v2922_v47 }
 0x22c   : > { %v4080_v25 = vpop.eup %4079  ;;  %v2923_v39 = vadd.f32 1.0, %v4078_v10  ;;  %v2746_v22 = vpop.xlane.xlu1 %2745 }
 0x22d   : > { %4101 = vpow2.f32 %v3595_v44  ;;  %v2809_v34 = vadd.f32 %v5139_v58, %v2746_v22  ;;  %3016 = vperm.xlu0 %3984, %v4080_v25   ;;  %v3600_v61 = vmul.f32 -1.442695, %v2808_v46 }
 0x22e   : > { %v4082_v36 = vpop.eup %4081  ;;  %4103 = vrcp.f32 %v2925_v56  ;;  %v2737_v8 = vpop.xlane.xlu0 %2736 }
 0x22f   : > { %v4084_v28 = vpop.eup %4083  ;;  %4105 = vpow2.f32 %v3594_v37  ;;  %v3601_v12 = vmul.f32 -1.442695, %v2809_v34  ;;  %v2806_v14 = vadd.f32 %v5139_v58, %v2737_v8  ;;  %3031 = vperm.xlu1 %3983, %v4082_v36  }
 0x230   : > { %v4086_v38 = vpop.eup %4085  ;;  %4107 = vrcp.f32 %v2923_v39  ;;  %v2929_v48 = vadd.f32 1.0, %v4084_v28  ;;  %v2740_v29 = vpop.xlane.xlu1 %2739 }
 0x231   : > { %v4088_v27 = vpop.eup %4087  ;;  %4109 = vpow2.f32 %v3601_v12  ;;  %v3598_v41 = vmul.f32 -1.442695, %v2806_v14  ;;  %v2807_v62 = vadd.f32 %v5139_v58, %v2740_v29  ;;  %v2928_v60 = vadd.f32 1.0, %v4086_v38 }
 0x232   : > { %v4090_v50 = vpop.eup %4089  ;;  %4111 = vrcp.f32 %v2929_v48  ;;  %v2755_v17 = vpop.xlane.xlu0 %2754 }
 0x233   : > { %v2927_v52 = vadd.f32 1.0, %v4090_v50  ;;  %4113 = vpow2.f32 %v3600_v61  ;;  %v3599_v9 = vmul.f32 -1.442695, %v2807_v62  ;;  %3021 = vperm.xlu1 %3983, %v4088_v27   ;;  %v4092_v42 = vpop.eup %4091  ;;  %v2812_v0 = vadd.f32 %v5139_v58, %v2755_v17 }
 0x234   : > { %4115 = vpow2.f32 %v3598_v41  ;;  %v2758_v26 = vpop.xlane.xlu1 %2757  ;;  %v4094_v63 = vpop.eup %4093  ;;  %v2926_v19 = vadd.f32 1.0, %v4092_v42 }
 0x235   : > { %4117 = vrcp.f32 %v2927_v52  ;;  %v2813_v15 = vadd.f32 %v5139_v58, %v2758_v26  ;;  %v3604_v40 = vmul.f32 -1.442695, %v2812_v0 }
 0x236   : > { %4119 = vpow2.f32 %v3599_v9  ;;  %v2749_v30 = vpop.xlane.xlu0 %2748  ;;  %v4096_v16 = vpop.eup %4095 }
 0x237   : > { %v3605_v55 = vmul.f32 -1.442695, %v2813_v15  ;;  %3046 = vperm.xlu1 %3983, %v4094_v63   ;;  %v4098_v21 = vpop.eup %4097  ;;  %4121 = vrcp.f32 %v2928_v60  ;;  %v2933_v57 = vadd.f32 1.0, %v4096_v16  ;;  %v2810_v6 = vadd.f32 %v5139_v58, %v2749_v30 }
 0x238   : > { %v2752_v1 = vpop.xlane.xlu1 %2751  ;;  %v4100_v59 = vpop.eup %4099  ;;  %v2932_v32 = vadd.f32 1.0, %v4098_v21 }
 0x239   : > { %4123 = vpow2.f32 %v3605_v55  ;;  %v2811_v49 = vadd.f32 %v5139_v58, %v2752_v1  ;;  %v3602_v53 = vmul.f32 -1.442695, %v2810_v6 }
 0x23a   : > { %v4102_v4 = vpop.eup %4101  ;;  %4125 = vrcp.f32 %v2933_v57  ;;  %v2767_v51 = vpop.xlane.xlu0 %2766 }
 0x23b   : > { %v4104_v33 = vpop.eup %4103  ;;  %4127 = vrcp.f32 %v2926_v19  ;;  %v2931_v11 = vadd.f32 1.0, %v4102_v4  ;;  %v3603_v45 = vmul.f32 -1.442695, %v2811_v49  ;;  %3036 = vperm.xlu1 %3983, %v4100_v59   ;;  %v2816_v3 = vadd.f32 %v5139_v58, %v2767_v51 }
 0x23c   : > { %v4106_v18 = vpop.eup %4105  ;;  %4129 = vpow2.f32 %v3604_v40  ;;  %v2770_v23 = vpop.xlane.xlu1 %2769 }
 0x23d   : > { %v4108_v35 = vpop.eup %4107  ;;  %4131 = vrcp.f32 %v2931_v11  ;;  %v2817_v2 = vadd.f32 %v5139_v58, %v2770_v23  ;;  %v2930_v7 = vadd.f32 1.0, %v4106_v18  ;;  %v3608_v54 = vmul.f32 -1.442695, %v2816_v3 }
 0x23e   : > { %v4110_v24 = vpop.eup %4109  ;;  %4133 = vpow2.f32 %v3603_v45  ;;  %v2761_v20 = vpop.xlane.xlu0 %2760 }
 0x23f   : > { %v4112_v43 = vpop.eup %4111  ;;  %4135 = vrcp.f32 %v2932_v32  ;;  %v2937_v13 = vadd.f32 1.0, %v4110_v24  ;;  %v3609_v47 = vmul.f32 -1.442695, %v2817_v2  ;;  %3051 = vperm.xlu1 %3983, %v4104_v33   ;;  %v2814_v56 = vadd.f32 %v5139_v58, %v2761_v20 }
 0x240   : > { %v4114_v5 = vpop.eup %4113  ;;  %4137 = vpow2.f32 %v3602_v53  ;;  %3071 = vperm.xlu0 %3984, %v4112_v43   ;;  %v2764_v31 = vpop.xlane.xlu1 %2763 }
 0x241   : > { %v4116_v10 = vpop.eup %4115  ;;  %4139 = vrcp.f32 %v2937_v13  ;;  %v2815_v37 = vadd.f32 %v5139_v58, %v2764_v31  ;;  %v2936_v39 = vadd.f32 1.0, %v4114_v5  ;;  %v3606_v8 = vmul.f32 -1.442695, %v2814_v56 }
 0x242   : > { %v4118_v44 = vpop.eup %4117  ;;  %4141 = vpow2.f32 %v3609_v47  ;;  %v2773_v46 = vpop.xlane.xlu0 %2772  ;;  %v2934_v38 = vadd.f32 1.0, %v4116_v10 }
 0x243   : > { %v4120_v25 = vpop.eup %4119  ;;  %4143 = vrcp.f32 %v2930_v7  ;;  %v3607_v22 = vmul.f32 -1.442695, %v2815_v37  ;;  %v2818_v34 = vadd.f32 %v5139_v58, %v2773_v46  ;;  %3041 = vperm.xlu1 %3983, %v4108_v35  }
 0x244   : > { %v2935_v36 = vadd.f32 1.0, %v4120_v25  ;;  %4145 = vpow2.f32 %v3608_v54  ;;  %3061 = vperm.xlu0 %3984, %v4118_v44   ;;  %v2782_v28 = vpop.xlane.xlu1 %2781  ;;  %v4122_v61 = vpop.eup %4121  ;;  %v4189_v25 = vld [vmem:[%s4701_s25 + $0x10] sm:$0xff] }
 0x245   : > { %4147 = vpow2.f32 %v3607_v22  ;;  %v2821_v12 = vadd.f32 %v5139_v58, %v2782_v28  ;;  %v3610_v41 = vmul.f32 -1.442695, %v2818_v34  ;;  %v4190_v34 = vld [vmem:[%s4701_s25] sm:$0xff]  ;;  %v4191_v28 = vld [vmem:[%s4701_s25 + $0x18] sm:$0xff] }
 0x246   : > { %v4124_v14 = vpop.eup %4123  ;;  %4149 = vrcp.f32 %v2935_v36  ;;  %v2779_v48 = vpop.xlane.xlu0 %2778 }
 0x247   : > { %v4126_v29 = vpop.eup %4125  ;;  %4151 = vrcp.f32 %v2936_v39  ;;  %v2941_v27 = vadd.f32 1.0, %v4124_v14  ;;  %3066 = vperm.xlu1 %3983, %v4122_v61   ;;  %v3613_v50 = vmul.f32 -1.442695, %v2821_v12  ;;  %v2820_v9 = vadd.f32 %v5139_v58, %v2779_v48  ;;  %v4192_v14 = vld [vmem:[%s4701_s25 + $0x8] sm:$0xff] }
 0x248   : > { %v4128_v62 = vpop.eup %4127  ;;  %4153 = vpow2.f32 %v3606_v8  ;;  %3091 = vperm.xlu0 %3984, %v4126_v29   ;;  %v2776_v17 = vpop.xlane.xlu1 %2775  ;;  %v4193_v29 = vld [vmem:[%s4701_s25 + $0x30] sm:$0xff] }
 0x249   : > { %v4130_v52 = vpop.eup %4129  ;;  %4155 = vrcp.f32 %v2941_v27  ;;  %v2819_v42 = vadd.f32 %v5139_v58, %v2776_v17  ;;  %v3612_v19 = vmul.f32 -1.442695, %v2820_v9  ;;  %v4195_v9 = vld [vmem:[%s4701_s25 + $0x38] sm:$0xff] }
 0x24a   : > { %v4132_v60 = vpop.eup %4131  ;;  %4157 = vrcp.f32 %v2934_v38  ;;  %v2940_v63 = vadd.f32 1.0, %v4130_v52 }
 0x24b   : > { %v4134_v0 = vpop.eup %4133  ;;  %4159 = vpow2.f32 %v3610_v41  ;;  %v3611_v26 = vmul.f32 -1.442695, %v2819_v42  ;;  %3056 = vperm.xlu1 %3983, %v4128_v62   ;;  %v4194_v62 = vld [vmem:[%s4701_s25 + $0x20] sm:$0xff] }
 0x24c   : > { %v4136_v15 = vpop.eup %4135  ;;  %v2939_v30 = vadd.f32 1.0, %v4134_v0  ;;  %4161 = vpow2.f32 %v3613_v50  ;;  %3081 = vperm.xlu0 %3984, %v4132_v60   ;;  %v4196_v60 = vld [vmem:[%s4701_s25 + $0x58] sm:$0xff] }
 0x24d   : > { %v4138_v16 = vpop.eup %4137  ;;  %4163 = vpow2.f32 %v3611_v26 }
 0x24e   : > { %v4140_v55 = vpop.eup %4139  ;;  %4165 = vrcp.f32 %v2939_v30  ;;  %v2938_v58 = vadd.f32 1.0, %v4138_v16  ;;  %v4198_v16 = vld [vmem:[%s4701_s25 + $0x48] sm:$0xff] }
 0x24f   : > { %v4142_v21 = vpop.eup %4141  ;;  %3086 = vperm.xlu1 %3983, %v4136_v15   ;;  %4167 = vrcp.f32 %v2940_v63  ;;  %v4197_v63 = vld [vmem:[%s4701_s25 + $0x28] sm:$0xff] }
 0x250   : > { %v4144_v57 = vpop.eup %4143  ;;  %v2945_v40 = vadd.f32 1.0, %v4142_v21  ;;  %3111 = vperm.xlu0 %3984, %v4140_v55   ;;  %4169 = vpow2.f32 %v3612_v19 }
 0x251   : > { %v4146_v6 = vpop.eup %4145 }
 0x252   : > { %v4148_v1 = vpop.eup %4147  ;;  %4171 = vrcp.f32 %v2945_v40  ;;  %v2944_v33 = vadd.f32 1.0, %v4146_v6  ;;  %v4200_v40 = vld [vmem:[%s4701_s25 + $0x78] sm:$0xff] }
 0x253   : > { %v4150_v59 = vpop.eup %4149  ;;  %v2943_v49 = vadd.f32 1.0, %v4148_v1  ;;  %3076 = vperm.xlu1 %3983, %v4144_v57   ;;  %4173 = vrcp.f32 %v2938_v58  ;;  %v4199_v57 = vld [vmem:[%s4701_s25 + $0x50] sm:$0xff] }
 0x254   : > { %v4152_v4 = vpop.eup %4151  ;;  %3101 = vperm.xlu0 %3984, %v4150_v59  }
 0x255   : > { %v4154_v51 = vpop.eup %4153  ;;  %4175 = vrcp.f32 %v2943_v49  ;;  %v4201_v49 = vld [vmem:[%s4701_s25 + $0x40] sm:$0xff] }
 0x256   : > { %v4156_v32 = vpop.eup %4155  ;;  %v2942_v18 = vadd.f32 1.0, %v4154_v51  ;;  %4177 = vrcp.f32 %v2944_v33  ;;  %v4202_v51 = vld [vmem:[%s4701_s25 + $0x68] sm:$0xff] }
 0x257   : > { %v4158_v11 = vpop.eup %4157  ;;  %3106 = vperm.xlu1 %3983, %v4152_v4  }
 0x258   : > { %v4160_v45 = vpop.eup %4159  ;;  %3131 = vperm.xlu0 %3984, %v4156_v32   ;;  %4179 = vrcp.f32 %v2942_v18 }
 0x259   : > { %v4162_v53 = vpop.eup %4161  ;;  %v2946_v2 = vadd.f32 1.0, %v4160_v45  ;;  %v4203_v45 = vld [vmem:[%s4701_s25 + $0x70] sm:$0xff] }
 0x25a   : > { %v4164_v3 = vpop.eup %4163  ;;  %v2949_v20 = vadd.f32 1.0, %v4162_v53  ;;  %v4204_v53 = vld [vmem:[%s4701_s25 + $0x98] sm:$0xff] }
 0x25b   : > { %v4166_v23 = vpop.eup %4165  ;;  %v2947_v35 = vadd.f32 1.0, %v4164_v3  ;;  %3096 = vperm.xlu1 %3983, %v4158_v11  }
 0x25c   : > { %3121 = vperm.xlu0 %3984, %v4166_v23   ;;  %v4168_v24 = vpop.eup %4167 }
 0x25d   : > { %4181 = vrcp.f32 %v2947_v35  ;;  %v4170_v43 = vpop.eup %4169 }
 0x25e   : > { %4183 = vrcp.f32 %v2946_v2  ;;  %v2948_v47 = vadd.f32 1.0, %v4170_v43  ;;  %v4205_v2 = vld [vmem:[%s4701_s25 + $0x60] sm:$0xff] }
 0x25f   : > { %v4172_v7 = vpop.eup %4171  ;;  %3126 = vperm.xlu1 %3983, %v4168_v24   ;;  %4185 = vrcp.f32 %v2949_v20  ;;  %v4206_v20 = vld [vmem:[%s4701_s25 + $0x88] sm:$0xff] }
 0x260   : > { %3151 = vperm.xlu0 %3984, %v4172_v7   ;;  %v4174_v13 = vpop.eup %4173  ;;  %4187 = vrcp.f32 %v2948_v47  ;;  %v4207_v47 = vld [vmem:[%s4701_s25 + $0x90] sm:$0xff] }
 0x262   : > { %v4176_v5 = vpop.eup %4175 }
 0x263   : > { %3116 = vperm.xlu1 %3983, %v4174_v13   ;;  %v4178_v54 = vpop.eup %4177 }
 0x264   : > { %3141 = vperm.xlu0 %3984, %v4176_v5  }
 0x265   : > { %v4180_v56 = vpop.eup %4179 }
 0x267   : > { %3146 = vperm.xlu1 %3983, %v4178_v54   ;;  %v4208_v54 = vld [vmem:[%s4701_s25 + $0xb8] sm:$0xff] }
 0x26a   : > { %v4182_v31 = vpop.eup %4181 }
 0x26b   : > { %3136 = vperm.xlu1 %3983, %v4180_v56   ;;  %3161 = vperm.xlu0 %3984, %v4182_v31   ;;  %v4184_v10 = vpop.eup %4183 }
 0x26c   : > { %v4186_v37 = vpop.eup %4185 }
 0x26d   : > { %v4188_v44 = vpop.eup %4187 }
 0x26f   : > { %3156 = vperm.xlu1 %3983, %v4184_v10   ;;  %3171 = vperm.xlu0 %3984, %v4186_v37   ;;  %v4209_v37 = vld [vmem:[%s4701_s25 + $0x80] sm:$0xff] }
 0x273   : > { %3166 = vperm.xlu1 %3983, %v4188_v44  }
 0x2a6   : > { %v3027_v46 = vpop.permute.xlu1 %3026 }
 0x2a7   : > { %v3176_v39 = vmul.f32 %v4189_v25, %v3027_v46  ;;  %v4210_v46 = vld [vmem:[%s4701_s25 + $0xa8] sm:$0xff] }
 0x2a8   : > { %v3017_v22 = vpop.permute.xlu0 %3016 }
 0x2a9   : > { %3208 = vst [vmem:[%s5175_s16 + $0x10] sm:$0xff] %v3176_v39  ;;  %v3174_v36 = vmul.f32 %v4190_v34, %v3017_v22  ;;  %v4211_v34 = vld [vmem:[%s4701_s25 + $0xb0] sm:$0xff] }
 0x2aa   : > { %v3032_v8 = vpop.permute.xlu1 %3031 }
 0x2ab   : > { %3206 = vst [vmem:[%s5175_s16] sm:$0xff] %v3174_v36  ;;  %v3177_v61 = vmul.f32 %v4191_v28, %v3032_v8  ;;  %v4212_v8 = vld [vmem:[%s4701_s25 + $0xd8] sm:$0xff] }
 0x2ad   : > { %3209 = vst [vmem:[%s5175_s16 + $0x18] sm:$0xff] %v3177_v61 }
 0x2ae   : > { %v3022_v12 = vpop.permute.xlu1 %3021 }
 0x2af   : > { %v3175_v38 = vmul.f32 %v4192_v14, %v3022_v12  ;;  %v4213_v14 = vld [vmem:[%s4701_s25 + $0xa0] sm:$0xff] }
 0x2b1   : > { %3207 = vst [vmem:[%s5175_s16 + $0x8] sm:$0xff] %v3175_v38 }
 0x2b2   : > { %v3047_v48 = vpop.permute.xlu1 %3046 }
 0x2b3   : > { %v3180_v27 = vmul.f32 %v4193_v29, %v3047_v48  ;;  %v4214_v48 = vld [vmem:[%s4701_s25 + $0xc8] sm:$0xff] }
 0x2b5   : > { %3212 = vst [vmem:[%s5175_s16 + $0x30] sm:$0xff] %v3180_v27 }
 0x2b6   : > { %v3037_v41 = vpop.permute.xlu1 %3036 }
 0x2b7   : > { %v3178_v50 = vmul.f32 %v4194_v62, %v3037_v41  ;;  %v4215_v41 = vld [vmem:[%s4701_s25 + $0xd0] sm:$0xff] }
 0x2b9   : > { %3210 = vst [vmem:[%s5175_s16 + $0x20] sm:$0xff] %v3178_v50 }
 0x2ba   : > { %v3052_v17 = vpop.permute.xlu1 %3051 }
 0x2bb   : > { %v3072_v52 = vpop.permute.xlu0 %3071  ;;  %v3181_v42 = vmul.f32 %v4195_v9, %v3052_v17 }
 0x2bc   : > { %v3185_v0 = vmul.f32 %v4196_v60, %v3072_v52  ;;  %v4216_v52 = vld [vmem:[%s4701_s25 + $0xe8] sm:$0xff] }
 0x2bd   : > { %3213 = vst [vmem:[%s5175_s16 + $0x38] sm:$0xff] %v3181_v42  ;;  %v4217_v42 = vld [vmem:[%s4701_s25 + $0xc0] sm:$0xff] }
 0x2be   : > { %3217 = vst [vmem:[%s5175_s16 + $0x58] sm:$0xff] %v3185_v0  ;;  %v3042_v26 = vpop.permute.xlu1 %3041 }
 0x2bf   : > { %v3062_v15 = vpop.permute.xlu0 %3061  ;;  %v3179_v30 = vmul.f32 %v4197_v63, %v3042_v26 }
 0x2c0   : > { %v3183_v19 = vmul.f32 %v4198_v16, %v3062_v15  ;;  %v4218_v15 = vld [vmem:[%s4701_s25 + $0xf8] sm:$0xff] }
 0x2c1   : > { %3211 = vst [vmem:[%s5175_s16 + $0x28] sm:$0xff] %v3179_v30  ;;  %v4219_v30 = vld [vmem:[%s4701_s25 + $0xe0] sm:$0xff] }
 0x2c2   : > { %3215 = vst [vmem:[%s5175_s16 + $0x48] sm:$0xff] %v3183_v19  ;;  %v3067_v55 = vpop.permute.xlu1 %3066 }
 0x2c3   : > { %v3092_v21 = vpop.permute.xlu0 %3091  ;;  %v3184_v58 = vmul.f32 %v4199_v57, %v3067_v55  ;;  %v4220_v55 = vld [vmem:[%s4701_s25 + $0xf0] sm:$0xff] }
 0x2c4   : > { %v3189_v6 = vmul.f32 %v4200_v40, %v3092_v21 }
 0x2c5   : > { %3216 = vst [vmem:[%s5175_s16 + $0x50] sm:$0xff] %v3184_v58 }
 0x2c6   : > { %3221 = vst [vmem:[%s5175_s16 + $0x78] sm:$0xff] %v3189_v6  ;;  %v3057_v1 = vpop.permute.xlu1 %3056 }
 0x2c7   : > { %v3082_v59 = vpop.permute.xlu0 %3081  ;;  %v3182_v4 = vmul.f32 %v4201_v49, %v3057_v1 }
 0x2c8   : > { %v3187_v33 = vmul.f32 %v4202_v51, %v3082_v59 }
 0x2c9   : > { %3214 = vst [vmem:[%s5175_s16 + $0x40] sm:$0xff] %v3182_v4 }
 0x2ca   : > { %3219 = vst [vmem:[%s5175_s16 + $0x68] sm:$0xff] %v3187_v33  ;;  %v3087_v32 = vpop.permute.xlu1 %3086 }
 0x2cb   : > { %v3112_v11 = vpop.permute.xlu0 %3111  ;;  %v3188_v18 = vmul.f32 %v4203_v45, %v3087_v32 }
 0x2cc   : > { %v3193_v3 = vmul.f32 %v4204_v53, %v3112_v11 }
 0x2cd   : > { %3220 = vst [vmem:[%s5175_s16 + $0x70] sm:$0xff] %v3188_v18 }
 0x2ce   : > { %3225 = vst [vmem:[%s5175_s16 + $0x98] sm:$0xff] %v3193_v3  ;;  %v3077_v23 = vpop.permute.xlu1 %3076 }
 0x2cf   : > { %v3102_v35 = vpop.permute.xlu0 %3101  ;;  %v3186_v24 = vmul.f32 %v4205_v2, %v3077_v23 }
 0x2d0   : > { %v3191_v43 = vmul.f32 %v4206_v20, %v3102_v35 }
 0x2d1   : > { %3218 = vst [vmem:[%s5175_s16 + $0x60] sm:$0xff] %v3186_v24 }
 0x2d2   : > { %3223 = vst [vmem:[%s5175_s16 + $0x88] sm:$0xff] %v3191_v43  ;;  %v3107_v7 = vpop.permute.xlu1 %3106 }
 0x2d3   : > { %v3132_v13 = vpop.permute.xlu0 %3131  ;;  %v3192_v5 = vmul.f32 %v4207_v47, %v3107_v7 }
 0x2d4   : > { %v3197_v56 = vmul.f32 %v4208_v54, %v3132_v13 }
 0x2d5   : > { %3224 = vst [vmem:[%s5175_s16 + $0x90] sm:$0xff] %v3192_v5 }
 0x2d6   : > { %3229 = vst [vmem:[%s5175_s16 + $0xb8] sm:$0xff] %v3197_v56  ;;  %v3097_v31 = vpop.permute.xlu1 %3096 }
 0x2d7   : > { %v3122_v10 = vpop.permute.xlu0 %3121  ;;  %v3190_v44 = vmul.f32 %v4209_v37, %v3097_v31 }
 0x2d8   : > { %v3195_v25 = vmul.f32 %v4210_v46, %v3122_v10 }
 0x2d9   : > { %3222 = vst [vmem:[%s5175_s16 + $0x80] sm:$0xff] %v3190_v44 }
 0x2da   : > { %3227 = vst [vmem:[%s5175_s16 + $0xa8] sm:$0xff] %v3195_v25  ;;  %v3127_v39 = vpop.permute.xlu1 %3126 }
 0x2db   : > { %v3152_v22 = vpop.permute.xlu0 %3151  ;;  %v3196_v36 = vmul.f32 %v4211_v34, %v3127_v39 }
 0x2dc   : > { %v3201_v28 = vmul.f32 %v4212_v8, %v3152_v22 }
 0x2dd   : > { %3228 = vst [vmem:[%s5175_s16 + $0xb0] sm:$0xff] %v3196_v36 }
 0x2de   : > { %3233 = vst [vmem:[%s5175_s16 + $0xd8] sm:$0xff] %v3201_v28  ;;  %v3117_v61 = vpop.permute.xlu1 %3116 }
 0x2df   : > { %v3142_v12 = vpop.permute.xlu0 %3141  ;;  %v3194_v38 = vmul.f32 %v4213_v14, %v3117_v61 }
 0x2e0   : > { %v3199_v29 = vmul.f32 %v4214_v48, %v3142_v12 }
 0x2e1   : > { %3226 = vst [vmem:[%s5175_s16 + $0xa0] sm:$0xff] %v3194_v38 }
 0x2e2   : > { %3231 = vst [vmem:[%s5175_s16 + $0xc8] sm:$0xff] %v3199_v29  ;;  %v3147_v27 = vpop.permute.xlu1 %3146 }
 0x2e3   : > { %v3200_v62 = vmul.f32 %v4215_v41, %v3147_v27 }
 0x2e5   : > { %3232 = vst [vmem:[%s5175_s16 + $0xd0] sm:$0xff] %v3200_v62 }
 0x2e6   : > { %v3162_v50 = vpop.permute.xlu0 %3161  ;;  %v3137_v17 = vpop.permute.xlu1 %3136 }
 0x2e7   : > { %v3203_v9 = vmul.f32 %v4216_v52, %v3162_v50  ;;  %v3198_v60 = vmul.f32 %v4217_v42, %v3137_v17 }
 0x2e9   : > { %3235 = vst [vmem:[%s5175_s16 + $0xe8] sm:$0xff] %v3203_v9  ;;  %3230 = vst [vmem:[%s5175_s16 + $0xc0] sm:$0xff] %v3198_v60 }
 0x2ea   : > { %v3172_v0 = vpop.permute.xlu0 %3171  ;;  %v3157_v26 = vpop.permute.xlu1 %3156 }
 0x2eb   : > { %v3205_v63 = vmul.f32 %v4218_v15, %v3172_v0  ;;  %v3202_v16 = vmul.f32 %v4219_v30, %v3157_v26 }
 0x2ed   : > { %3237 = vst [vmem:[%s5175_s16 + $0xf8] sm:$0xff] %v3205_v63  ;;  %3234 = vst [vmem:[%s5175_s16 + $0xe0] sm:$0xff] %v3202_v16 }
 0x2ee   : > { %v3167_v19 = vpop.permute.xlu1 %3166 }
 0x2ef   : > { %v3204_v21 = vmul.f32 %v4220_v55, %v3167_v19 }
 0x2f1   : > { %3236 = vst [vmem:[%s5175_s16 + $0xf0] sm:$0xff] %v3204_v21 }
 0x2f2   : > { %4234 = shalt.err (!%p4231_p7)
}
 0x2f3   : > { %s4235_s25 = scalar_lea.hbm %s5243_s21, 4096  ;;  %s4239_s15 = scalar_lea.hbm %s5297_s7, 8192 }
 0x2f4   : > { %p4236_p10 = scmp.ne.s32.totalorder %s5243_s21, %s4235_s25  ;;  %p4240_p13 = scmp.lt.s32.totalorder %s5243_s21, %s5297_s7 }
 0x2f5   : > { %p4241_p0 = scmp.lt.s32.totalorder %s4239_s15, %s4235_s25 }
 0x2f6   : > { %p4237_p11 = pnand %p4236_p10, %p4369_p6 }
 0x2f7   : > { %p4242_p1 = por %p4241_p0, %p4240_p13 }
 0x2f8   : > { %p4238_p12 = pneg %p4237_p11 }
 0x2fa   : > { %p4243_p2 = pnand %p4242_p1, %p4238_p12 }
 0x2fc   : > { %4246 = shalt.err (!%p4243_p2)
}
 0x2fd   : > { %s4285_s19 = smov 128   ;;  %s4286_s20 = smov 8  }
 0x2fe   : > { %3941 = dma.vmem_to_hbm [thread:$0]  (%p4369_p6), %s5245_s18, 4096, %s5243_s21, %s3239_s22, %s4285_s19, %s4285_s19, %s4286_s20  }
 0x2ff PF: > { %s3267_s24 = sand.u32 1, %s4269_s26   ;;  %p3944_p3 = pnand %p3334_p9, %p4373_p8 }
 0x300   : > { %s3268_s6 = scalar_lea.sflag [#allocation5], %s3267_s24 }
 0x301   : > { %p3945_p4 = pneg %p3944_p3 }
 0x303   : > { %4264 = dma.done.wait (%p3945_p4), %s3268_s6, 4096  }
 0x304   : > { %4266 = vsyncadd (%p3945_p4), %s3268_s6, 4294963200  ;;  %p19_p5 = scmp.ge.s32.totalorder %s4355_s8, 4   ;;  %s5358_s26 = smov %s4273_s27 }
 0x305   : > { %s5359_s27 = smov %s4277_s28  ;;  %s5360_s28 = smov %s4367_s11 }
 0x306   : > { %s5361_s29 = smov %s4355_s8  ;;  %21 = sbr.rel (!%p19_p5) target bundleno = 6 (0x6), region = 135 }
 0x30b   :  { %3273 = vsyncpa [#allocation5], 1 }
 0x30c   :  { %3275 = vsyncpa [#allocation5 + $0x1], 1 }

</bundles_post_ra>
